<compile_context>
chip_gen: v6e
topology: v6e:2x2x1
jax: 0.10.0
libtpu: 0.0.40
codegen_flags: <defaults>
</compile_context>

<pallas_src>
import functools

import jax
import jax.numpy as jnp
from jax import lax
from jax.experimental import pallas as pl
from jax.experimental.pallas import tpu as pltpu

LAYER_SIZE = 8
OUTPUT_DIM = 3
NUM_FEATS = (LAYER_SIZE - 1) * (LAYER_SIZE - 1) + 1  # 50
LANES = 128
CHUNK = 16      # sublanes per register-resident chunk (2 vregs per array)
NUM_ACC = 2     # independent partial-sum chains per output channel (VALU ILP)


def cheb_fcn2d_kernel(uv_ref, w_ref, b_ref, o_ref):
    # uv_ref: (2, TR, 128) VMEM   -- u = uv[0], v = uv[1], points on lanes
    # w_ref : (NUM_FEATS*OUTPUT_DIM,) SMEM, flat W^T: w_ref[k*3 + o] = weight[o, k]
    # b_ref : (OUTPUT_DIM,) SMEM
    # o_ref : (OUTPUT_DIM, TR, 128) VMEM, lane-dense output planes
    tr = uv_ref.shape[1]
    n_chunks = tr // CHUNK

    def chunk_body(c, carry):
        r0 = pl.multiple_of(c * CHUNK, CHUNK)
        u = uv_ref[0, pl.ds(r0, CHUNK), :]
        v = uv_ref[1, pl.ds(r0, CHUNK), :]

        # Chebyshev T_1..T_{L-1}(v); all 7 kept live (reused for every i).
        # two_v hoisted; T_0 never materialized (T_2 = 2*v*v - 1).
        two_v = v + v
        ypolys = [v, two_v * v - 1.0]
        for _ in range(3, LAYER_SIZE):
            ypolys.append(two_v * ypolys[-1] - ypolys[-2])

        # X polys generated on the fly via the 2-term recurrence so only two
        # of them are live at any time.
        two_u = u + u
        x_prev = None        # T_{i-1}(u)
        x_cur = u            # T_1(u)

        # Partial accumulators (None == "not written yet") -> no zero splats.
        accs = [[None] * NUM_ACC for _ in range(OUTPUT_DIM)]

        k = 1
        for i in range(1, LAYER_SIZE):
            for j in range(1, LAYER_SIZE):
                f = x_cur * ypolys[j - 1]        # shared by all 3 outputs
                slot = k % NUM_ACC
                for o in range(OUTPUT_DIM):
                    term = f * w_ref[k * OUTPUT_DIM + o]
                    accs[o][slot] = (term if accs[o][slot] is None
                                     else accs[o][slot] + term)
                k += 1
            if i < LAYER_SIZE - 1:               # advance the X recurrence
                x_next = (two_u * x_cur - 1.0) if i == 1 \
                    else (two_u * x_cur - x_prev)
                x_prev, x_cur = x_cur, x_next

        for o in range(OUTPUT_DIM):
            total = accs[o][0]
            for a in accs[o][1:]:
                total = total + a
            # Constant feature (k=0, value 1) and bias folded into one scalar.
            o_ref[o, pl.ds(r0, CHUNK), :] = total + (w_ref[o] + b_ref[o])
        return carry

    lax.fori_loop(0, n_chunks, chunk_body, 0)


def _round_up(a, b):
    return -(-a // b) * b


@functools.partial(jax.jit, static_argnames=("tile_rows",))
def cheb_fcn2d_forward(x, weight, bias, *, tile_rows=512):
    """x: [N, 2]; weight: [OUTPUT_DIM, NUM_FEATS] (torch nn.Linear layout); bias: [OUTPUT_DIM]."""
    N = x.shape[0]
    if N == 0:  # static at trace time; avoids a zero-size grid
        return jnp.zeros((0, OUTPUT_DIM), jnp.float32)
    x = x.astype(jnp.float32)

    rows = pl.cdiv(N, LANES)                     # number of 128-point rows
    # Tile rows: multiple of CHUNK, capped at tile_rows; shrink so the grid
    # has >=2 steps when possible (keeps both v7x TensorCores busy).
    half = _round_up(pl.cdiv(rows, 2), CHUNK)
    tr = min(_round_up(tile_rows, CHUNK), half)
    rows_pad = _round_up(rows, tr)
    n_pad = rows_pad * LANES

    # Lane-dense packed input: u and v stacked into one slab (one DMA/step).
    uv = jnp.stack([x[:, 0], x[:, 1]], axis=0)                    # (2, N)
    uv = jnp.pad(uv, ((0, 0), (0, n_pad - N))).reshape(2, rows_pad, LANES)

    w_flat = weight.T.astype(jnp.float32).reshape(-1)   # w_flat[k*3+o] = weight[o,k]
    b = bias.astype(jnp.float32).reshape(OUTPUT_DIM)

    grid = (rows_pad // tr,)
    out = pl.pallas_call(
        cheb_fcn2d_kernel,
        out_shape=jax.ShapeDtypeStruct((OUTPUT_DIM, rows_pad, LANES), jnp.float32),
        grid_spec=pltpu.PrefetchScalarGridSpec(
            num_scalar_prefetch=0,
            grid=grid,
            in_specs=[
                pl.BlockSpec((2, tr, LANES), lambda i: (0, i, 0)),
                pl.BlockSpec(memory_space=pltpu.MemorySpace.SMEM),   # flat W^T
                pl.BlockSpec(memory_space=pltpu.MemorySpace.SMEM),   # bias
            ],
            out_specs=pl.BlockSpec((OUTPUT_DIM, tr, LANES), lambda i: (0, i, 0)),
        ),
        compiler_params=pltpu.CompilerParams(
            dimension_semantics=("parallel",)),
        cost_estimate=pl.CostEstimate(
            flops=380 * n_pad, transcendentals=0, bytes_accessed=20 * n_pad),
    )(uv, w_flat, b)

    # (3, rows_pad, 128) -> (N, 3).  Pure layout plumbing; consumers that can
    # accept the lane-dense (rows, 128, 3) layout may skip this.
    out = jnp.transpose(out, (1, 2, 0)).reshape(n_pad, OUTPUT_DIM)
    return out[:N]


def cheb_fcn2d_reference(x, weight, bias):
    """Pure-JAX reference mirroring the PyTorch forward exactly."""
    def prepaire(t):  # t: (N, 1)
        polys = [jnp.ones_like(t), t]
        for _ in range(2, LAYER_SIZE):
            polys.append(2.0 * t * polys[-1] - polys[-2])
        return jnp.concatenate(polys, axis=1)  # (N, L)

    X = prepaire(x[:, 0:1])
    Y = prepaire(x[:, 1:2])
    feats = [jnp.ones_like(x[:, 0:1])]
    for i in range(1, LAYER_SIZE):
        for j in range(1, LAYER_SIZE):
            feats.append((X[:, i] * Y[:, j])[:, None])
    R = jnp.concatenate(feats, axis=1)  # (N, NUM_FEATS)
    return R @ weight.T + bias[None, :]


if __name__ == "__main__":
    key = jax.random.PRNGKey(0)
    kx, kw, kb = jax.random.split(key, 3)

    # Small deterministic example; N deliberately not a multiple of 128 to
    # exercise the ragged-N padding path.
    N = 400
    x = jax.random.uniform(kx, (N, 2), dtype=jnp.float32, minval=-1.0, maxval=1.0)

    # torch nn.Linear shapes: weight (out, in), bias (out,)
    weight = 0.1 * jax.random.normal(kw, (OUTPUT_DIM, NUM_FEATS), dtype=jnp.float32)
    bias = 0.1 * jax.random.normal(kb, (OUTPUT_DIM,), dtype=jnp.float32)

    out = cheb_fcn2d_forward(x, weight, bias)
    out = jax.block_until_ready(out)

    ref = cheb_fcn2d_reference(x, weight, bias)
    assert out.shape == (N, OUTPUT_DIM)
    assert jnp.allclose(out, ref, atol=1e-4, rtol=1e-4), "mismatch vs reference"

    print("KERNEL_OK")
</pallas_src>

<mosaic_0001>
module attributes {stable_mosaic.version = 11 : i64} {
  func.func @cheb_fcn2d_kernel(%arg0: i32, %arg1: memref<2x16x128xf32, #tpu.memory_space<vmem>>, %arg2: memref<150xf32, #tpu.memory_space<smem>>, %arg3: memref<3xf32, #tpu.memory_space<smem>>, %arg4: memref<3x16x128xf32, #tpu.memory_space<vmem>>) attributes {dimension_semantics = [#tpu.dimension_semantics<parallel>], iteration_bounds = array<i64: 1>, scalar_prefetch = 0 : i64, scratch_operands = 0 : i64, tpu.core_type = #tpu.core_type<tc>, window_params = [{transform_indices = @transform_0, window_bounds = array<i64: 2, 16, 128>}, {transform_indices = @transform_1, window_bounds = array<i64: 150>}, {transform_indices = @transform_2, window_bounds = array<i64: 3>}, {transform_indices = @transform_3, window_bounds = array<i64: 3, 16, 128>}]} {
    %c0_i32 = arith.constant 0 : i32
    %c16_i32 = arith.constant 16 : i32
    %0 = arith.muli %c0_i32, %c16_i32 : i32
    %1 = tpu.assume_multiple %0, 16 : i32
    %c0 = arith.constant 0 : index
    %2 = arith.index_cast %1 : i32 to index
    %c0_0 = arith.constant 0 : index
    %3 = vector.load %arg1[%c0, %2, %c0_0] : memref<2x16x128xf32, #tpu.memory_space<vmem>>, vector<1x16x128xf32>
    %4 = vector.shape_cast %3 : vector<1x16x128xf32> to vector<16x128xf32>
    %c1 = arith.constant 1 : index
    %5 = arith.index_cast %1 : i32 to index
    %c0_1 = arith.constant 0 : index
    %6 = vector.load %arg1[%c1, %5, %c0_1] : memref<2x16x128xf32, #tpu.memory_space<vmem>>, vector<1x16x128xf32>
    %7 = vector.shape_cast %6 : vector<1x16x128xf32> to vector<16x128xf32>
    %8 = arith.addf %7, %7 : vector<16x128xf32>
    %9 = arith.mulf %8, %7 : vector<16x128xf32>
    %cst = arith.constant 1.000000e+00 : f32
    %10 = vector.broadcast %cst : f32 to vector<16x128xf32>
    %11 = arith.subf %9, %10 : vector<16x128xf32>
    %12 = arith.mulf %8, %11 : vector<16x128xf32>
    %13 = arith.subf %12, %7 : vector<16x128xf32>
    %14 = arith.mulf %8, %13 : vector<16x128xf32>
    %15 = arith.subf %14, %11 : vector<16x128xf32>
    %16 = arith.mulf %8, %15 : vector<16x128xf32>
    %17 = arith.subf %16, %13 : vector<16x128xf32>
    %18 = arith.mulf %8, %17 : vector<16x128xf32>
    %19 = arith.subf %18, %15 : vector<16x128xf32>
    %20 = arith.mulf %8, %19 : vector<16x128xf32>
    %21 = arith.subf %20, %17 : vector<16x128xf32>
    %22 = arith.addf %4, %4 : vector<16x128xf32>
    %23 = arith.mulf %4, %7 : vector<16x128xf32>
    %c3 = arith.constant 3 : index
    %24 = memref.load %arg2[%c3] : memref<150xf32, #tpu.memory_space<smem>>
    %25 = vector.broadcast %24 : f32 to vector<16x128xf32>
    %26 = arith.mulf %23, %25 : vector<16x128xf32>
    %c4 = arith.constant 4 : index
    %27 = memref.load %arg2[%c4] : memref<150xf32, #tpu.memory_space<smem>>
    %28 = vector.broadcast %27 : f32 to vector<16x128xf32>
    %29 = arith.mulf %23, %28 : vector<16x128xf32>
    %c5 = arith.constant 5 : index
    %30 = memref.load %arg2[%c5] : memref<150xf32, #tpu.memory_space<smem>>
    %31 = vector.broadcast %30 : f32 to vector<16x128xf32>
    %32 = arith.mulf %23, %31 : vector<16x128xf32>
    %33 = arith.mulf %4, %11 : vector<16x128xf32>
    %c6 = arith.constant 6 : index
    %34 = memref.load %arg2[%c6] : memref<150xf32, #tpu.memory_space<smem>>
    %35 = vector.broadcast %34 : f32 to vector<16x128xf32>
    %36 = arith.mulf %33, %35 : vector<16x128xf32>
    %c7 = arith.constant 7 : index
    %37 = memref.load %arg2[%c7] : memref<150xf32, #tpu.memory_space<smem>>
    %38 = vector.broadcast %37 : f32 to vector<16x128xf32>
    %39 = arith.mulf %33, %38 : vector<16x128xf32>
    %c8 = arith.constant 8 : index
    %40 = memref.load %arg2[%c8] : memref<150xf32, #tpu.memory_space<smem>>
    %41 = vector.broadcast %40 : f32 to vector<16x128xf32>
    %42 = arith.mulf %33, %41 : vector<16x128xf32>
    %43 = arith.mulf %4, %13 : vector<16x128xf32>
    %c9 = arith.constant 9 : index
    %44 = memref.load %arg2[%c9] : memref<150xf32, #tpu.memory_space<smem>>
    %45 = vector.broadcast %44 : f32 to vector<16x128xf32>
    %46 = arith.mulf %43, %45 : vector<16x128xf32>
    %47 = arith.addf %26, %46 : vector<16x128xf32>
    %c10 = arith.constant 10 : index
    %48 = memref.load %arg2[%c10] : memref<150xf32, #tpu.memory_space<smem>>
    %49 = vector.broadcast %48 : f32 to vector<16x128xf32>
    %50 = arith.mulf %43, %49 : vector<16x128xf32>
    %51 = arith.addf %29, %50 : vector<16x128xf32>
    %c11 = arith.constant 11 : index
    %52 = memref.load %arg2[%c11] : memref<150xf32, #tpu.memory_space<smem>>
    %53 = vector.broadcast %52 : f32 to vector<16x128xf32>
    %54 = arith.mulf %43, %53 : vector<16x128xf32>
    %55 = arith.addf %32, %54 : vector<16x128xf32>
    %56 = arith.mulf %4, %15 : vector<16x128xf32>
    %c12 = arith.constant 12 : index
    %57 = memref.load %arg2[%c12] : memref<150xf32, #tpu.memory_space<smem>>
    %58 = vector.broadcast %57 : f32 to vector<16x128xf32>
    %59 = arith.mulf %56, %58 : vector<16x128xf32>
    %60 = arith.addf %36, %59 : vector<16x128xf32>
    %c13 = arith.constant 13 : index
    %61 = memref.load %arg2[%c13] : memref<150xf32, #tpu.memory_space<smem>>
    %62 = vector.broadcast %61 : f32 to vector<16x128xf32>
    %63 = arith.mulf %56, %62 : vector<16x128xf32>
    %64 = arith.addf %39, %63 : vector<16x128xf32>
    %c14 = arith.constant 14 : index
    %65 = memref.load %arg2[%c14] : memref<150xf32, #tpu.memory_space<smem>>
    %66 = vector.broadcast %65 : f32 to vector<16x128xf32>
    %67 = arith.mulf %56, %66 : vector<16x128xf32>
    %68 = arith.addf %42, %67 : vector<16x128xf32>
    %69 = arith.mulf %4, %17 : vector<16x128xf32>
    %c15 = arith.constant 15 : index
    %70 = memref.load %arg2[%c15] : memref<150xf32, #tpu.memory_space<smem>>
    %71 = vector.broadcast %70 : f32 to vector<16x128xf32>
    %72 = arith.mulf %69, %71 : vector<16x128xf32>
    %73 = arith.addf %47, %72 : vector<16x128xf32>
    %c16 = arith.constant 16 : index
    %74 = memref.load %arg2[%c16] : memref<150xf32, #tpu.memory_space<smem>>
    %75 = vector.broadcast %74 : f32 to vector<16x128xf32>
    %76 = arith.mulf %69, %75 : vector<16x128xf32>
    %77 = arith.addf %51, %76 : vector<16x128xf32>
    %c17 = arith.constant 17 : index
    %78 = memref.load %arg2[%c17] : memref<150xf32, #tpu.memory_space<smem>>
    %79 = vector.broadcast %78 : f32 to vector<16x128xf32>
    %80 = arith.mulf %69, %79 : vector<16x128xf32>
    %81 = arith.addf %55, %80 : vector<16x128xf32>
    %82 = arith.mulf %4, %19 : vector<16x128xf32>
    %c18 = arith.constant 18 : index
    %83 = memref.load %arg2[%c18] : memref<150xf32, #tpu.memory_space<smem>>
    %84 = vector.broadcast %83 : f32 to vector<16x128xf32>
    %85 = arith.mulf %82, %84 : vector<16x128xf32>
    %86 = arith.addf %60, %85 : vector<16x128xf32>
    %c19 = arith.constant 19 : index
    %87 = memref.load %arg2[%c19] : memref<150xf32, #tpu.memory_space<smem>>
    %88 = vector.broadcast %87 : f32 to vector<16x128xf32>
    %89 = arith.mulf %82, %88 : vector<16x128xf32>
    %90 = arith.addf %64, %89 : vector<16x128xf32>
    %c20 = arith.constant 20 : index
    %91 = memref.load %arg2[%c20] : memref<150xf32, #tpu.memory_space<smem>>
    %92 = vector.broadcast %91 : f32 to vector<16x128xf32>
    %93 = arith.mulf %82, %92 : vector<16x128xf32>
    %94 = arith.addf %68, %93 : vector<16x128xf32>
    %95 = arith.mulf %4, %21 : vector<16x128xf32>
    %c21 = arith.constant 21 : index
    %96 = memref.load %arg2[%c21] : memref<150xf32, #tpu.memory_space<smem>>
    %97 = vector.broadcast %96 : f32 to vector<16x128xf32>
    %98 = arith.mulf %95, %97 : vector<16x128xf32>
    %99 = arith.addf %73, %98 : vector<16x128xf32>
    %c22 = arith.constant 22 : index
    %100 = memref.load %arg2[%c22] : memref<150xf32, #tpu.memory_space<smem>>
    %101 = vector.broadcast %100 : f32 to vector<16x128xf32>
    %102 = arith.mulf %95, %101 : vector<16x128xf32>
    %103 = arith.addf %77, %102 : vector<16x128xf32>
    %c23 = arith.constant 23 : index
    %104 = memref.load %arg2[%c23] : memref<150xf32, #tpu.memory_space<smem>>
    %105 = vector.broadcast %104 : f32 to vector<16x128xf32>
    %106 = arith.mulf %95, %105 : vector<16x128xf32>
    %107 = arith.addf %81, %106 : vector<16x128xf32>
    %108 = arith.mulf %22, %4 : vector<16x128xf32>
    %cst_2 = arith.constant 1.000000e+00 : f32
    %109 = vector.broadcast %cst_2 : f32 to vector<16x128xf32>
    %110 = arith.subf %108, %109 : vector<16x128xf32>
    %111 = arith.mulf %110, %7 : vector<16x128xf32>
    %c24 = arith.constant 24 : index
    %112 = memref.load %arg2[%c24] : memref<150xf32, #tpu.memory_space<smem>>
    %113 = vector.broadcast %112 : f32 to vector<16x128xf32>
    %114 = arith.mulf %111, %113 : vector<16x128xf32>
    %115 = arith.addf %86, %114 : vector<16x128xf32>
    %c25 = arith.constant 25 : index
    %116 = memref.load %arg2[%c25] : memref<150xf32, #tpu.memory_space<smem>>
    %117 = vector.broadcast %116 : f32 to vector<16x128xf32>
    %118 = arith.mulf %111, %117 : vector<16x128xf32>
    %119 = arith.addf %90, %118 : vector<16x128xf32>
    %c26 = arith.constant 26 : index
    %120 = memref.load %arg2[%c26] : memref<150xf32, #tpu.memory_space<smem>>
    %121 = vector.broadcast %120 : f32 to vector<16x128xf32>
    %122 = arith.mulf %111, %121 : vector<16x128xf32>
    %123 = arith.addf %94, %122 : vector<16x128xf32>
    %124 = arith.mulf %110, %11 : vector<16x128xf32>
    %c27 = arith.constant 27 : index
    %125 = memref.load %arg2[%c27] : memref<150xf32, #tpu.memory_space<smem>>
    %126 = vector.broadcast %125 : f32 to vector<16x128xf32>
    %127 = arith.mulf %124, %126 : vector<16x128xf32>
    %128 = arith.addf %99, %127 : vector<16x128xf32>
    %c28 = arith.constant 28 : index
    %129 = memref.load %arg2[%c28] : memref<150xf32, #tpu.memory_space<smem>>
    %130 = vector.broadcast %129 : f32 to vector<16x128xf32>
    %131 = arith.mulf %124, %130 : vector<16x128xf32>
    %132 = arith.addf %103, %131 : vector<16x128xf32>
    %c29 = arith.constant 29 : index
    %133 = memref.load %arg2[%c29] : memref<150xf32, #tpu.memory_space<smem>>
    %134 = vector.broadcast %133 : f32 to vector<16x128xf32>
    %135 = arith.mulf %124, %134 : vector<16x128xf32>
    %136 = arith.addf %107, %135 : vector<16x128xf32>
    %137 = arith.mulf %110, %13 : vector<16x128xf32>
    %c30 = arith.constant 30 : index
    %138 = memref.load %arg2[%c30] : memref<150xf32, #tpu.memory_space<smem>>
    %139 = vector.broadcast %138 : f32 to vector<16x128xf32>
    %140 = arith.mulf %137, %139 : vector<16x128xf32>
    %141 = arith.addf %115, %140 : vector<16x128xf32>
    %c31 = arith.constant 31 : index
    %142 = memref.load %arg2[%c31] : memref<150xf32, #tpu.memory_space<smem>>
    %143 = vector.broadcast %142 : f32 to vector<16x128xf32>
    %144 = arith.mulf %137, %143 : vector<16x128xf32>
    %145 = arith.addf %119, %144 : vector<16x128xf32>
    %c32 = arith.constant 32 : index
    %146 = memref.load %arg2[%c32] : memref<150xf32, #tpu.memory_space<smem>>
    %147 = vector.broadcast %146 : f32 to vector<16x128xf32>
    %148 = arith.mulf %137, %147 : vector<16x128xf32>
    %149 = arith.addf %123, %148 : vector<16x128xf32>
    %150 = arith.mulf %110, %15 : vector<16x128xf32>
    %c33 = arith.constant 33 : index
    %151 = memref.load %arg2[%c33] : memref<150xf32, #tpu.memory_space<smem>>
    %152 = vector.broadcast %151 : f32 to vector<16x128xf32>
    %153 = arith.mulf %150, %152 : vector<16x128xf32>
    %154 = arith.addf %128, %153 : vector<16x128xf32>
    %c34 = arith.constant 34 : index
    %155 = memref.load %arg2[%c34] : memref<150xf32, #tpu.memory_space<smem>>
    %156 = vector.broadcast %155 : f32 to vector<16x128xf32>
    %157 = arith.mulf %150, %156 : vector<16x128xf32>
    %158 = arith.addf %132, %157 : vector<16x128xf32>
    %c35 = arith.constant 35 : index
    %159 = memref.load %arg2[%c35] : memref<150xf32, #tpu.memory_space<smem>>
    %160 = vector.broadcast %159 : f32 to vector<16x128xf32>
    %161 = arith.mulf %150, %160 : vector<16x128xf32>
    %162 = arith.addf %136, %161 : vector<16x128xf32>
    %163 = arith.mulf %110, %17 : vector<16x128xf32>
    %c36 = arith.constant 36 : index
    %164 = memref.load %arg2[%c36] : memref<150xf32, #tpu.memory_space<smem>>
    %165 = vector.broadcast %164 : f32 to vector<16x128xf32>
    %166 = arith.mulf %163, %165 : vector<16x128xf32>
    %167 = arith.addf %141, %166 : vector<16x128xf32>
    %c37 = arith.constant 37 : index
    %168 = memref.load %arg2[%c37] : memref<150xf32, #tpu.memory_space<smem>>
    %169 = vector.broadcast %168 : f32 to vector<16x128xf32>
    %170 = arith.mulf %163, %169 : vector<16x128xf32>
    %171 = arith.addf %145, %170 : vector<16x128xf32>
    %c38 = arith.constant 38 : index
    %172 = memref.load %arg2[%c38] : memref<150xf32, #tpu.memory_space<smem>>
    %173 = vector.broadcast %172 : f32 to vector<16x128xf32>
    %174 = arith.mulf %163, %173 : vector<16x128xf32>
    %175 = arith.addf %149, %174 : vector<16x128xf32>
    %176 = arith.mulf %110, %19 : vector<16x128xf32>
    %c39 = arith.constant 39 : index
    %177 = memref.load %arg2[%c39] : memref<150xf32, #tpu.memory_space<smem>>
    %178 = vector.broadcast %177 : f32 to vector<16x128xf32>
    %179 = arith.mulf %176, %178 : vector<16x128xf32>
    %180 = arith.addf %154, %179 : vector<16x128xf32>
    %c40 = arith.constant 40 : index
    %181 = memref.load %arg2[%c40] : memref<150xf32, #tpu.memory_space<smem>>
    %182 = vector.broadcast %181 : f32 to vector<16x128xf32>
    %183 = arith.mulf %176, %182 : vector<16x128xf32>
    %184 = arith.addf %158, %183 : vector<16x128xf32>
    %c41 = arith.constant 41 : index
    %185 = memref.load %arg2[%c41] : memref<150xf32, #tpu.memory_space<smem>>
    %186 = vector.broadcast %185 : f32 to vector<16x128xf32>
    %187 = arith.mulf %176, %186 : vector<16x128xf32>
    %188 = arith.addf %162, %187 : vector<16x128xf32>
    %189 = arith.mulf %110, %21 : vector<16x128xf32>
    %c42 = arith.constant 42 : index
    %190 = memref.load %arg2[%c42] : memref<150xf32, #tpu.memory_space<smem>>
    %191 = vector.broadcast %190 : f32 to vector<16x128xf32>
    %192 = arith.mulf %189, %191 : vector<16x128xf32>
    %193 = arith.addf %167, %192 : vector<16x128xf32>
    %c43 = arith.constant 43 : index
    %194 = memref.load %arg2[%c43] : memref<150xf32, #tpu.memory_space<smem>>
    %195 = vector.broadcast %194 : f32 to vector<16x128xf32>
    %196 = arith.mulf %189, %195 : vector<16x128xf32>
    %197 = arith.addf %171, %196 : vector<16x128xf32>
    %c44 = arith.constant 44 : index
    %198 = memref.load %arg2[%c44] : memref<150xf32, #tpu.memory_space<smem>>
    %199 = vector.broadcast %198 : f32 to vector<16x128xf32>
    %200 = arith.mulf %189, %199 : vector<16x128xf32>
    %201 = arith.addf %175, %200 : vector<16x128xf32>
    %202 = arith.mulf %22, %110 : vector<16x128xf32>
    %203 = arith.subf %202, %4 : vector<16x128xf32>
    %204 = arith.mulf %203, %7 : vector<16x128xf32>
    %c45 = arith.constant 45 : index
    %205 = memref.load %arg2[%c45] : memref<150xf32, #tpu.memory_space<smem>>
    %206 = vector.broadcast %205 : f32 to vector<16x128xf32>
    %207 = arith.mulf %204, %206 : vector<16x128xf32>
    %208 = arith.addf %180, %207 : vector<16x128xf32>
    %c46 = arith.constant 46 : index
    %209 = memref.load %arg2[%c46] : memref<150xf32, #tpu.memory_space<smem>>
    %210 = vector.broadcast %209 : f32 to vector<16x128xf32>
    %211 = arith.mulf %204, %210 : vector<16x128xf32>
    %212 = arith.addf %184, %211 : vector<16x128xf32>
    %c47 = arith.constant 47 : index
    %213 = memref.load %arg2[%c47] : memref<150xf32, #tpu.memory_space<smem>>
    %214 = vector.broadcast %213 : f32 to vector<16x128xf32>
    %215 = arith.mulf %204, %214 : vector<16x128xf32>
    %216 = arith.addf %188, %215 : vector<16x128xf32>
    %217 = arith.mulf %203, %11 : vector<16x128xf32>
    %c48 = arith.constant 48 : index
    %218 = memref.load %arg2[%c48] : memref<150xf32, #tpu.memory_space<smem>>
    %219 = vector.broadcast %218 : f32 to vector<16x128xf32>
    %220 = arith.mulf %217, %219 : vector<16x128xf32>
    %221 = arith.addf %193, %220 : vector<16x128xf32>
    %c49 = arith.constant 49 : index
    %222 = memref.load %arg2[%c49] : memref<150xf32, #tpu.memory_space<smem>>
    %223 = vector.broadcast %222 : f32 to vector<16x128xf32>
    %224 = arith.mulf %217, %223 : vector<16x128xf32>
    %225 = arith.addf %197, %224 : vector<16x128xf32>
    %c50 = arith.constant 50 : index
    %226 = memref.load %arg2[%c50] : memref<150xf32, #tpu.memory_space<smem>>
    %227 = vector.broadcast %226 : f32 to vector<16x128xf32>
    %228 = arith.mulf %217, %227 : vector<16x128xf32>
    %229 = arith.addf %201, %228 : vector<16x128xf32>
    %230 = arith.mulf %203, %13 : vector<16x128xf32>
    %c51 = arith.constant 51 : index
    %231 = memref.load %arg2[%c51] : memref<150xf32, #tpu.memory_space<smem>>
    %232 = vector.broadcast %231 : f32 to vector<16x128xf32>
    %233 = arith.mulf %230, %232 : vector<16x128xf32>
    %234 = arith.addf %208, %233 : vector<16x128xf32>
    %c52 = arith.constant 52 : index
    %235 = memref.load %arg2[%c52] : memref<150xf32, #tpu.memory_space<smem>>
    %236 = vector.broadcast %235 : f32 to vector<16x128xf32>
    %237 = arith.mulf %230, %236 : vector<16x128xf32>
    %238 = arith.addf %212, %237 : vector<16x128xf32>
    %c53 = arith.constant 53 : index
    %239 = memref.load %arg2[%c53] : memref<150xf32, #tpu.memory_space<smem>>
    %240 = vector.broadcast %239 : f32 to vector<16x128xf32>
    %241 = arith.mulf %230, %240 : vector<16x128xf32>
    %242 = arith.addf %216, %241 : vector<16x128xf32>
    %243 = arith.mulf %203, %15 : vector<16x128xf32>
    %c54 = arith.constant 54 : index
    %244 = memref.load %arg2[%c54] : memref<150xf32, #tpu.memory_space<smem>>
    %245 = vector.broadcast %244 : f32 to vector<16x128xf32>
    %246 = arith.mulf %243, %245 : vector<16x128xf32>
    %247 = arith.addf %221, %246 : vector<16x128xf32>
    %c55 = arith.constant 55 : index
    %248 = memref.load %arg2[%c55] : memref<150xf32, #tpu.memory_space<smem>>
    %249 = vector.broadcast %248 : f32 to vector<16x128xf32>
    %250 = arith.mulf %243, %249 : vector<16x128xf32>
    %251 = arith.addf %225, %250 : vector<16x128xf32>
    %c56 = arith.constant 56 : index
    %252 = memref.load %arg2[%c56] : memref<150xf32, #tpu.memory_space<smem>>
    %253 = vector.broadcast %252 : f32 to vector<16x128xf32>
    %254 = arith.mulf %243, %253 : vector<16x128xf32>
    %255 = arith.addf %229, %254 : vector<16x128xf32>
    %256 = arith.mulf %203, %17 : vector<16x128xf32>
    %c57 = arith.constant 57 : index
    %257 = memref.load %arg2[%c57] : memref<150xf32, #tpu.memory_space<smem>>
    %258 = vector.broadcast %257 : f32 to vector<16x128xf32>
    %259 = arith.mulf %256, %258 : vector<16x128xf32>
    %260 = arith.addf %234, %259 : vector<16x128xf32>
    %c58 = arith.constant 58 : index
    %261 = memref.load %arg2[%c58] : memref<150xf32, #tpu.memory_space<smem>>
    %262 = vector.broadcast %261 : f32 to vector<16x128xf32>
    %263 = arith.mulf %256, %262 : vector<16x128xf32>
    %264 = arith.addf %238, %263 : vector<16x128xf32>
    %c59 = arith.constant 59 : index
    %265 = memref.load %arg2[%c59] : memref<150xf32, #tpu.memory_space<smem>>
    %266 = vector.broadcast %265 : f32 to vector<16x128xf32>
    %267 = arith.mulf %256, %266 : vector<16x128xf32>
    %268 = arith.addf %242, %267 : vector<16x128xf32>
    %269 = arith.mulf %203, %19 : vector<16x128xf32>
    %c60 = arith.constant 60 : index
    %270 = memref.load %arg2[%c60] : memref<150xf32, #tpu.memory_space<smem>>
    %271 = vector.broadcast %270 : f32 to vector<16x128xf32>
    %272 = arith.mulf %269, %271 : vector<16x128xf32>
    %273 = arith.addf %247, %272 : vector<16x128xf32>
    %c61 = arith.constant 61 : index
    %274 = memref.load %arg2[%c61] : memref<150xf32, #tpu.memory_space<smem>>
    %275 = vector.broadcast %274 : f32 to vector<16x128xf32>
    %276 = arith.mulf %269, %275 : vector<16x128xf32>
    %277 = arith.addf %251, %276 : vector<16x128xf32>
    %c62 = arith.constant 62 : index
    %278 = memref.load %arg2[%c62] : memref<150xf32, #tpu.memory_space<smem>>
    %279 = vector.broadcast %278 : f32 to vector<16x128xf32>
    %280 = arith.mulf %269, %279 : vector<16x128xf32>
    %281 = arith.addf %255, %280 : vector<16x128xf32>
    %282 = arith.mulf %203, %21 : vector<16x128xf32>
    %c63 = arith.constant 63 : index
    %283 = memref.load %arg2[%c63] : memref<150xf32, #tpu.memory_space<smem>>
    %284 = vector.broadcast %283 : f32 to vector<16x128xf32>
    %285 = arith.mulf %282, %284 : vector<16x128xf32>
    %286 = arith.addf %260, %285 : vector<16x128xf32>
    %c64 = arith.constant 64 : index
    %287 = memref.load %arg2[%c64] : memref<150xf32, #tpu.memory_space<smem>>
    %288 = vector.broadcast %287 : f32 to vector<16x128xf32>
    %289 = arith.mulf %282, %288 : vector<16x128xf32>
    %290 = arith.addf %264, %289 : vector<16x128xf32>
    %c65 = arith.constant 65 : index
    %291 = memref.load %arg2[%c65] : memref<150xf32, #tpu.memory_space<smem>>
    %292 = vector.broadcast %291 : f32 to vector<16x128xf32>
    %293 = arith.mulf %282, %292 : vector<16x128xf32>
    %294 = arith.addf %268, %293 : vector<16x128xf32>
    %295 = arith.mulf %22, %203 : vector<16x128xf32>
    %296 = arith.subf %295, %110 : vector<16x128xf32>
    %297 = arith.mulf %296, %7 : vector<16x128xf32>
    %c66 = arith.constant 66 : index
    %298 = memref.load %arg2[%c66] : memref<150xf32, #tpu.memory_space<smem>>
    %299 = vector.broadcast %298 : f32 to vector<16x128xf32>
    %300 = arith.mulf %297, %299 : vector<16x128xf32>
    %301 = arith.addf %273, %300 : vector<16x128xf32>
    %c67 = arith.constant 67 : index
    %302 = memref.load %arg2[%c67] : memref<150xf32, #tpu.memory_space<smem>>
    %303 = vector.broadcast %302 : f32 to vector<16x128xf32>
    %304 = arith.mulf %297, %303 : vector<16x128xf32>
    %305 = arith.addf %277, %304 : vector<16x128xf32>
    %c68 = arith.constant 68 : index
    %306 = memref.load %arg2[%c68] : memref<150xf32, #tpu.memory_space<smem>>
    %307 = vector.broadcast %306 : f32 to vector<16x128xf32>
    %308 = arith.mulf %297, %307 : vector<16x128xf32>
    %309 = arith.addf %281, %308 : vector<16x128xf32>
    %310 = arith.mulf %296, %11 : vector<16x128xf32>
    %c69 = arith.constant 69 : index
    %311 = memref.load %arg2[%c69] : memref<150xf32, #tpu.memory_space<smem>>
    %312 = vector.broadcast %311 : f32 to vector<16x128xf32>
    %313 = arith.mulf %310, %312 : vector<16x128xf32>
    %314 = arith.addf %286, %313 : vector<16x128xf32>
    %c70 = arith.constant 70 : index
    %315 = memref.load %arg2[%c70] : memref<150xf32, #tpu.memory_space<smem>>
    %316 = vector.broadcast %315 : f32 to vector<16x128xf32>
    %317 = arith.mulf %310, %316 : vector<16x128xf32>
    %318 = arith.addf %290, %317 : vector<16x128xf32>
    %c71 = arith.constant 71 : index
    %319 = memref.load %arg2[%c71] : memref<150xf32, #tpu.memory_space<smem>>
    %320 = vector.broadcast %319 : f32 to vector<16x128xf32>
    %321 = arith.mulf %310, %320 : vector<16x128xf32>
    %322 = arith.addf %294, %321 : vector<16x128xf32>
    %323 = arith.mulf %296, %13 : vector<16x128xf32>
    %c72 = arith.constant 72 : index
    %324 = memref.load %arg2[%c72] : memref<150xf32, #tpu.memory_space<smem>>
    %325 = vector.broadcast %324 : f32 to vector<16x128xf32>
    %326 = arith.mulf %323, %325 : vector<16x128xf32>
    %327 = arith.addf %301, %326 : vector<16x128xf32>
    %c73 = arith.constant 73 : index
    %328 = memref.load %arg2[%c73] : memref<150xf32, #tpu.memory_space<smem>>
    %329 = vector.broadcast %328 : f32 to vector<16x128xf32>
    %330 = arith.mulf %323, %329 : vector<16x128xf32>
    %331 = arith.addf %305, %330 : vector<16x128xf32>
    %c74 = arith.constant 74 : index
    %332 = memref.load %arg2[%c74] : memref<150xf32, #tpu.memory_space<smem>>
    %333 = vector.broadcast %332 : f32 to vector<16x128xf32>
    %334 = arith.mulf %323, %333 : vector<16x128xf32>
    %335 = arith.addf %309, %334 : vector<16x128xf32>
    %336 = arith.mulf %296, %15 : vector<16x128xf32>
    %c75 = arith.constant 75 : index
    %337 = memref.load %arg2[%c75] : memref<150xf32, #tpu.memory_space<smem>>
    %338 = vector.broadcast %337 : f32 to vector<16x128xf32>
    %339 = arith.mulf %336, %338 : vector<16x128xf32>
    %340 = arith.addf %314, %339 : vector<16x128xf32>
    %c76 = arith.constant 76 : index
    %341 = memref.load %arg2[%c76] : memref<150xf32, #tpu.memory_space<smem>>
    %342 = vector.broadcast %341 : f32 to vector<16x128xf32>
    %343 = arith.mulf %336, %342 : vector<16x128xf32>
    %344 = arith.addf %318, %343 : vector<16x128xf32>
    %c77 = arith.constant 77 : index
    %345 = memref.load %arg2[%c77] : memref<150xf32, #tpu.memory_space<smem>>
    %346 = vector.broadcast %345 : f32 to vector<16x128xf32>
    %347 = arith.mulf %336, %346 : vector<16x128xf32>
    %348 = arith.addf %322, %347 : vector<16x128xf32>
    %349 = arith.mulf %296, %17 : vector<16x128xf32>
    %c78 = arith.constant 78 : index
    %350 = memref.load %arg2[%c78] : memref<150xf32, #tpu.memory_space<smem>>
    %351 = vector.broadcast %350 : f32 to vector<16x128xf32>
    %352 = arith.mulf %349, %351 : vector<16x128xf32>
    %353 = arith.addf %327, %352 : vector<16x128xf32>
    %c79 = arith.constant 79 : index
    %354 = memref.load %arg2[%c79] : memref<150xf32, #tpu.memory_space<smem>>
    %355 = vector.broadcast %354 : f32 to vector<16x128xf32>
    %356 = arith.mulf %349, %355 : vector<16x128xf32>
    %357 = arith.addf %331, %356 : vector<16x128xf32>
    %c80 = arith.constant 80 : index
    %358 = memref.load %arg2[%c80] : memref<150xf32, #tpu.memory_space<smem>>
    %359 = vector.broadcast %358 : f32 to vector<16x128xf32>
    %360 = arith.mulf %349, %359 : vector<16x128xf32>
    %361 = arith.addf %335, %360 : vector<16x128xf32>
    %362 = arith.mulf %296, %19 : vector<16x128xf32>
    %c81 = arith.constant 81 : index
    %363 = memref.load %arg2[%c81] : memref<150xf32, #tpu.memory_space<smem>>
    %364 = vector.broadcast %363 : f32 to vector<16x128xf32>
    %365 = arith.mulf %362, %364 : vector<16x128xf32>
    %366 = arith.addf %340, %365 : vector<16x128xf32>
    %c82 = arith.constant 82 : index
    %367 = memref.load %arg2[%c82] : memref<150xf32, #tpu.memory_space<smem>>
    %368 = vector.broadcast %367 : f32 to vector<16x128xf32>
    %369 = arith.mulf %362, %368 : vector<16x128xf32>
    %370 = arith.addf %344, %369 : vector<16x128xf32>
    %c83 = arith.constant 83 : index
    %371 = memref.load %arg2[%c83] : memref<150xf32, #tpu.memory_space<smem>>
    %372 = vector.broadcast %371 : f32 to vector<16x128xf32>
    %373 = arith.mulf %362, %372 : vector<16x128xf32>
    %374 = arith.addf %348, %373 : vector<16x128xf32>
    %375 = arith.mulf %296, %21 : vector<16x128xf32>
    %c84 = arith.constant 84 : index
    %376 = memref.load %arg2[%c84] : memref<150xf32, #tpu.memory_space<smem>>
    %377 = vector.broadcast %376 : f32 to vector<16x128xf32>
    %378 = arith.mulf %375, %377 : vector<16x128xf32>
    %379 = arith.addf %353, %378 : vector<16x128xf32>
    %c85 = arith.constant 85 : index
    %380 = memref.load %arg2[%c85] : memref<150xf32, #tpu.memory_space<smem>>
    %381 = vector.broadcast %380 : f32 to vector<16x128xf32>
    %382 = arith.mulf %375, %381 : vector<16x128xf32>
    %383 = arith.addf %357, %382 : vector<16x128xf32>
    %c86 = arith.constant 86 : index
    %384 = memref.load %arg2[%c86] : memref<150xf32, #tpu.memory_space<smem>>
    %385 = vector.broadcast %384 : f32 to vector<16x128xf32>
    %386 = arith.mulf %375, %385 : vector<16x128xf32>
    %387 = arith.addf %361, %386 : vector<16x128xf32>
    %388 = arith.mulf %22, %296 : vector<16x128xf32>
    %389 = arith.subf %388, %203 : vector<16x128xf32>
    %390 = arith.mulf %389, %7 : vector<16x128xf32>
    %c87 = arith.constant 87 : index
    %391 = memref.load %arg2[%c87] : memref<150xf32, #tpu.memory_space<smem>>
    %392 = vector.broadcast %391 : f32 to vector<16x128xf32>
    %393 = arith.mulf %390, %392 : vector<16x128xf32>
    %394 = arith.addf %366, %393 : vector<16x128xf32>
    %c88 = arith.constant 88 : index
    %395 = memref.load %arg2[%c88] : memref<150xf32, #tpu.memory_space<smem>>
    %396 = vector.broadcast %395 : f32 to vector<16x128xf32>
    %397 = arith.mulf %390, %396 : vector<16x128xf32>
    %398 = arith.addf %370, %397 : vector<16x128xf32>
    %c89 = arith.constant 89 : index
    %399 = memref.load %arg2[%c89] : memref<150xf32, #tpu.memory_space<smem>>
    %400 = vector.broadcast %399 : f32 to vector<16x128xf32>
    %401 = arith.mulf %390, %400 : vector<16x128xf32>
    %402 = arith.addf %374, %401 : vector<16x128xf32>
    %403 = arith.mulf %389, %11 : vector<16x128xf32>
    %c90 = arith.constant 90 : index
    %404 = memref.load %arg2[%c90] : memref<150xf32, #tpu.memory_space<smem>>
    %405 = vector.broadcast %404 : f32 to vector<16x128xf32>
    %406 = arith.mulf %403, %405 : vector<16x128xf32>
    %407 = arith.addf %379, %406 : vector<16x128xf32>
    %c91 = arith.constant 91 : index
    %408 = memref.load %arg2[%c91] : memref<150xf32, #tpu.memory_space<smem>>
    %409 = vector.broadcast %408 : f32 to vector<16x128xf32>
    %410 = arith.mulf %403, %409 : vector<16x128xf32>
    %411 = arith.addf %383, %410 : vector<16x128xf32>
    %c92 = arith.constant 92 : index
    %412 = memref.load %arg2[%c92] : memref<150xf32, #tpu.memory_space<smem>>
    %413 = vector.broadcast %412 : f32 to vector<16x128xf32>
    %414 = arith.mulf %403, %413 : vector<16x128xf32>
    %415 = arith.addf %387, %414 : vector<16x128xf32>
    %416 = arith.mulf %389, %13 : vector<16x128xf32>
    %c93 = arith.constant 93 : index
    %417 = memref.load %arg2[%c93] : memref<150xf32, #tpu.memory_space<smem>>
    %418 = vector.broadcast %417 : f32 to vector<16x128xf32>
    %419 = arith.mulf %416, %418 : vector<16x128xf32>
    %420 = arith.addf %394, %419 : vector<16x128xf32>
    %c94 = arith.constant 94 : index
    %421 = memref.load %arg2[%c94] : memref<150xf32, #tpu.memory_space<smem>>
    %422 = vector.broadcast %421 : f32 to vector<16x128xf32>
    %423 = arith.mulf %416, %422 : vector<16x128xf32>
    %424 = arith.addf %398, %423 : vector<16x128xf32>
    %c95 = arith.constant 95 : index
    %425 = memref.load %arg2[%c95] : memref<150xf32, #tpu.memory_space<smem>>
    %426 = vector.broadcast %425 : f32 to vector<16x128xf32>
    %427 = arith.mulf %416, %426 : vector<16x128xf32>
    %428 = arith.addf %402, %427 : vector<16x128xf32>
    %429 = arith.mulf %389, %15 : vector<16x128xf32>
    %c96 = arith.constant 96 : index
    %430 = memref.load %arg2[%c96] : memref<150xf32, #tpu.memory_space<smem>>
    %431 = vector.broadcast %430 : f32 to vector<16x128xf32>
    %432 = arith.mulf %429, %431 : vector<16x128xf32>
    %433 = arith.addf %407, %432 : vector<16x128xf32>
    %c97 = arith.constant 97 : index
    %434 = memref.load %arg2[%c97] : memref<150xf32, #tpu.memory_space<smem>>
    %435 = vector.broadcast %434 : f32 to vector<16x128xf32>
    %436 = arith.mulf %429, %435 : vector<16x128xf32>
    %437 = arith.addf %411, %436 : vector<16x128xf32>
    %c98 = arith.constant 98 : index
    %438 = memref.load %arg2[%c98] : memref<150xf32, #tpu.memory_space<smem>>
    %439 = vector.broadcast %438 : f32 to vector<16x128xf32>
    %440 = arith.mulf %429, %439 : vector<16x128xf32>
    %441 = arith.addf %415, %440 : vector<16x128xf32>
    %442 = arith.mulf %389, %17 : vector<16x128xf32>
    %c99 = arith.constant 99 : index
    %443 = memref.load %arg2[%c99] : memref<150xf32, #tpu.memory_space<smem>>
    %444 = vector.broadcast %443 : f32 to vector<16x128xf32>
    %445 = arith.mulf %442, %444 : vector<16x128xf32>
    %446 = arith.addf %420, %445 : vector<16x128xf32>
    %c100 = arith.constant 100 : index
    %447 = memref.load %arg2[%c100] : memref<150xf32, #tpu.memory_space<smem>>
    %448 = vector.broadcast %447 : f32 to vector<16x128xf32>
    %449 = arith.mulf %442, %448 : vector<16x128xf32>
    %450 = arith.addf %424, %449 : vector<16x128xf32>
    %c101 = arith.constant 101 : index
    %451 = memref.load %arg2[%c101] : memref<150xf32, #tpu.memory_space<smem>>
    %452 = vector.broadcast %451 : f32 to vector<16x128xf32>
    %453 = arith.mulf %442, %452 : vector<16x128xf32>
    %454 = arith.addf %428, %453 : vector<16x128xf32>
    %455 = arith.mulf %389, %19 : vector<16x128xf32>
    %c102 = arith.constant 102 : index
    %456 = memref.load %arg2[%c102] : memref<150xf32, #tpu.memory_space<smem>>
    %457 = vector.broadcast %456 : f32 to vector<16x128xf32>
    %458 = arith.mulf %455, %457 : vector<16x128xf32>
    %459 = arith.addf %433, %458 : vector<16x128xf32>
    %c103 = arith.constant 103 : index
    %460 = memref.load %arg2[%c103] : memref<150xf32, #tpu.memory_space<smem>>
    %461 = vector.broadcast %460 : f32 to vector<16x128xf32>
    %462 = arith.mulf %455, %461 : vector<16x128xf32>
    %463 = arith.addf %437, %462 : vector<16x128xf32>
    %c104 = arith.constant 104 : index
    %464 = memref.load %arg2[%c104] : memref<150xf32, #tpu.memory_space<smem>>
    %465 = vector.broadcast %464 : f32 to vector<16x128xf32>
    %466 = arith.mulf %455, %465 : vector<16x128xf32>
    %467 = arith.addf %441, %466 : vector<16x128xf32>
    %468 = arith.mulf %389, %21 : vector<16x128xf32>
    %c105 = arith.constant 105 : index
    %469 = memref.load %arg2[%c105] : memref<150xf32, #tpu.memory_space<smem>>
    %470 = vector.broadcast %469 : f32 to vector<16x128xf32>
    %471 = arith.mulf %468, %470 : vector<16x128xf32>
    %472 = arith.addf %446, %471 : vector<16x128xf32>
    %c106 = arith.constant 106 : index
    %473 = memref.load %arg2[%c106] : memref<150xf32, #tpu.memory_space<smem>>
    %474 = vector.broadcast %473 : f32 to vector<16x128xf32>
    %475 = arith.mulf %468, %474 : vector<16x128xf32>
    %476 = arith.addf %450, %475 : vector<16x128xf32>
    %c107 = arith.constant 107 : index
    %477 = memref.load %arg2[%c107] : memref<150xf32, #tpu.memory_space<smem>>
    %478 = vector.broadcast %477 : f32 to vector<16x128xf32>
    %479 = arith.mulf %468, %478 : vector<16x128xf32>
    %480 = arith.addf %454, %479 : vector<16x128xf32>
    %481 = arith.mulf %22, %389 : vector<16x128xf32>
    %482 = arith.subf %481, %296 : vector<16x128xf32>
    %483 = arith.mulf %482, %7 : vector<16x128xf32>
    %c108 = arith.constant 108 : index
    %484 = memref.load %arg2[%c108] : memref<150xf32, #tpu.memory_space<smem>>
    %485 = vector.broadcast %484 : f32 to vector<16x128xf32>
    %486 = arith.mulf %483, %485 : vector<16x128xf32>
    %487 = arith.addf %459, %486 : vector<16x128xf32>
    %c109 = arith.constant 109 : index
    %488 = memref.load %arg2[%c109] : memref<150xf32, #tpu.memory_space<smem>>
    %489 = vector.broadcast %488 : f32 to vector<16x128xf32>
    %490 = arith.mulf %483, %489 : vector<16x128xf32>
    %491 = arith.addf %463, %490 : vector<16x128xf32>
    %c110 = arith.constant 110 : index
    %492 = memref.load %arg2[%c110] : memref<150xf32, #tpu.memory_space<smem>>
    %493 = vector.broadcast %492 : f32 to vector<16x128xf32>
    %494 = arith.mulf %483, %493 : vector<16x128xf32>
    %495 = arith.addf %467, %494 : vector<16x128xf32>
    %496 = arith.mulf %482, %11 : vector<16x128xf32>
    %c111 = arith.constant 111 : index
    %497 = memref.load %arg2[%c111] : memref<150xf32, #tpu.memory_space<smem>>
    %498 = vector.broadcast %497 : f32 to vector<16x128xf32>
    %499 = arith.mulf %496, %498 : vector<16x128xf32>
    %500 = arith.addf %472, %499 : vector<16x128xf32>
    %c112 = arith.constant 112 : index
    %501 = memref.load %arg2[%c112] : memref<150xf32, #tpu.memory_space<smem>>
    %502 = vector.broadcast %501 : f32 to vector<16x128xf32>
    %503 = arith.mulf %496, %502 : vector<16x128xf32>
    %504 = arith.addf %476, %503 : vector<16x128xf32>
    %c113 = arith.constant 113 : index
    %505 = memref.load %arg2[%c113] : memref<150xf32, #tpu.memory_space<smem>>
    %506 = vector.broadcast %505 : f32 to vector<16x128xf32>
    %507 = arith.mulf %496, %506 : vector<16x128xf32>
    %508 = arith.addf %480, %507 : vector<16x128xf32>
    %509 = arith.mulf %482, %13 : vector<16x128xf32>
    %c114 = arith.constant 114 : index
    %510 = memref.load %arg2[%c114] : memref<150xf32, #tpu.memory_space<smem>>
    %511 = vector.broadcast %510 : f32 to vector<16x128xf32>
    %512 = arith.mulf %509, %511 : vector<16x128xf32>
    %513 = arith.addf %487, %512 : vector<16x128xf32>
    %c115 = arith.constant 115 : index
    %514 = memref.load %arg2[%c115] : memref<150xf32, #tpu.memory_space<smem>>
    %515 = vector.broadcast %514 : f32 to vector<16x128xf32>
    %516 = arith.mulf %509, %515 : vector<16x128xf32>
    %517 = arith.addf %491, %516 : vector<16x128xf32>
    %c116 = arith.constant 116 : index
    %518 = memref.load %arg2[%c116] : memref<150xf32, #tpu.memory_space<smem>>
    %519 = vector.broadcast %518 : f32 to vector<16x128xf32>
    %520 = arith.mulf %509, %519 : vector<16x128xf32>
    %521 = arith.addf %495, %520 : vector<16x128xf32>
    %522 = arith.mulf %482, %15 : vector<16x128xf32>
    %c117 = arith.constant 117 : index
    %523 = memref.load %arg2[%c117] : memref<150xf32, #tpu.memory_space<smem>>
    %524 = vector.broadcast %523 : f32 to vector<16x128xf32>
    %525 = arith.mulf %522, %524 : vector<16x128xf32>
    %526 = arith.addf %500, %525 : vector<16x128xf32>
    %c118 = arith.constant 118 : index
    %527 = memref.load %arg2[%c118] : memref<150xf32, #tpu.memory_space<smem>>
    %528 = vector.broadcast %527 : f32 to vector<16x128xf32>
    %529 = arith.mulf %522, %528 : vector<16x128xf32>
    %530 = arith.addf %504, %529 : vector<16x128xf32>
    %c119 = arith.constant 119 : index
    %531 = memref.load %arg2[%c119] : memref<150xf32, #tpu.memory_space<smem>>
    %532 = vector.broadcast %531 : f32 to vector<16x128xf32>
    %533 = arith.mulf %522, %532 : vector<16x128xf32>
    %534 = arith.addf %508, %533 : vector<16x128xf32>
    %535 = arith.mulf %482, %17 : vector<16x128xf32>
    %c120 = arith.constant 120 : index
    %536 = memref.load %arg2[%c120] : memref<150xf32, #tpu.memory_space<smem>>
    %537 = vector.broadcast %536 : f32 to vector<16x128xf32>
    %538 = arith.mulf %535, %537 : vector<16x128xf32>
    %539 = arith.addf %513, %538 : vector<16x128xf32>
    %c121 = arith.constant 121 : index
    %540 = memref.load %arg2[%c121] : memref<150xf32, #tpu.memory_space<smem>>
    %541 = vector.broadcast %540 : f32 to vector<16x128xf32>
    %542 = arith.mulf %535, %541 : vector<16x128xf32>
    %543 = arith.addf %517, %542 : vector<16x128xf32>
    %c122 = arith.constant 122 : index
    %544 = memref.load %arg2[%c122] : memref<150xf32, #tpu.memory_space<smem>>
    %545 = vector.broadcast %544 : f32 to vector<16x128xf32>
    %546 = arith.mulf %535, %545 : vector<16x128xf32>
    %547 = arith.addf %521, %546 : vector<16x128xf32>
    %548 = arith.mulf %482, %19 : vector<16x128xf32>
    %c123 = arith.constant 123 : index
    %549 = memref.load %arg2[%c123] : memref<150xf32, #tpu.memory_space<smem>>
    %550 = vector.broadcast %549 : f32 to vector<16x128xf32>
    %551 = arith.mulf %548, %550 : vector<16x128xf32>
    %552 = arith.addf %526, %551 : vector<16x128xf32>
    %c124 = arith.constant 124 : index
    %553 = memref.load %arg2[%c124] : memref<150xf32, #tpu.memory_space<smem>>
    %554 = vector.broadcast %553 : f32 to vector<16x128xf32>
    %555 = arith.mulf %548, %554 : vector<16x128xf32>
    %556 = arith.addf %530, %555 : vector<16x128xf32>
    %c125 = arith.constant 125 : index
    %557 = memref.load %arg2[%c125] : memref<150xf32, #tpu.memory_space<smem>>
    %558 = vector.broadcast %557 : f32 to vector<16x128xf32>
    %559 = arith.mulf %548, %558 : vector<16x128xf32>
    %560 = arith.addf %534, %559 : vector<16x128xf32>
    %561 = arith.mulf %482, %21 : vector<16x128xf32>
    %c126 = arith.constant 126 : index
    %562 = memref.load %arg2[%c126] : memref<150xf32, #tpu.memory_space<smem>>
    %563 = vector.broadcast %562 : f32 to vector<16x128xf32>
    %564 = arith.mulf %561, %563 : vector<16x128xf32>
    %565 = arith.addf %539, %564 : vector<16x128xf32>
    %c127 = arith.constant 127 : index
    %566 = memref.load %arg2[%c127] : memref<150xf32, #tpu.memory_space<smem>>
    %567 = vector.broadcast %566 : f32 to vector<16x128xf32>
    %568 = arith.mulf %561, %567 : vector<16x128xf32>
    %569 = arith.addf %543, %568 : vector<16x128xf32>
    %c128 = arith.constant 128 : index
    %570 = memref.load %arg2[%c128] : memref<150xf32, #tpu.memory_space<smem>>
    %571 = vector.broadcast %570 : f32 to vector<16x128xf32>
    %572 = arith.mulf %561, %571 : vector<16x128xf32>
    %573 = arith.addf %547, %572 : vector<16x128xf32>
    %574 = arith.mulf %22, %482 : vector<16x128xf32>
    %575 = arith.subf %574, %389 : vector<16x128xf32>
    %576 = arith.mulf %575, %7 : vector<16x128xf32>
    %c129 = arith.constant 129 : index
    %577 = memref.load %arg2[%c129] : memref<150xf32, #tpu.memory_space<smem>>
    %578 = vector.broadcast %577 : f32 to vector<16x128xf32>
    %579 = arith.mulf %576, %578 : vector<16x128xf32>
    %580 = arith.addf %552, %579 : vector<16x128xf32>
    %c130 = arith.constant 130 : index
    %581 = memref.load %arg2[%c130] : memref<150xf32, #tpu.memory_space<smem>>
    %582 = vector.broadcast %581 : f32 to vector<16x128xf32>
    %583 = arith.mulf %576, %582 : vector<16x128xf32>
    %584 = arith.addf %556, %583 : vector<16x128xf32>
    %c131 = arith.constant 131 : index
    %585 = memref.load %arg2[%c131] : memref<150xf32, #tpu.memory_space<smem>>
    %586 = vector.broadcast %585 : f32 to vector<16x128xf32>
    %587 = arith.mulf %576, %586 : vector<16x128xf32>
    %588 = arith.addf %560, %587 : vector<16x128xf32>
    %589 = arith.mulf %575, %11 : vector<16x128xf32>
    %c132 = arith.constant 132 : index
    %590 = memref.load %arg2[%c132] : memref<150xf32, #tpu.memory_space<smem>>
    %591 = vector.broadcast %590 : f32 to vector<16x128xf32>
    %592 = arith.mulf %589, %591 : vector<16x128xf32>
    %593 = arith.addf %565, %592 : vector<16x128xf32>
    %c133 = arith.constant 133 : index
    %594 = memref.load %arg2[%c133] : memref<150xf32, #tpu.memory_space<smem>>
    %595 = vector.broadcast %594 : f32 to vector<16x128xf32>
    %596 = arith.mulf %589, %595 : vector<16x128xf32>
    %597 = arith.addf %569, %596 : vector<16x128xf32>
    %c134 = arith.constant 134 : index
    %598 = memref.load %arg2[%c134] : memref<150xf32, #tpu.memory_space<smem>>
    %599 = vector.broadcast %598 : f32 to vector<16x128xf32>
    %600 = arith.mulf %589, %599 : vector<16x128xf32>
    %601 = arith.addf %573, %600 : vector<16x128xf32>
    %602 = arith.mulf %575, %13 : vector<16x128xf32>
    %c135 = arith.constant 135 : index
    %603 = memref.load %arg2[%c135] : memref<150xf32, #tpu.memory_space<smem>>
    %604 = vector.broadcast %603 : f32 to vector<16x128xf32>
    %605 = arith.mulf %602, %604 : vector<16x128xf32>
    %606 = arith.addf %580, %605 : vector<16x128xf32>
    %c136 = arith.constant 136 : index
    %607 = memref.load %arg2[%c136] : memref<150xf32, #tpu.memory_space<smem>>
    %608 = vector.broadcast %607 : f32 to vector<16x128xf32>
    %609 = arith.mulf %602, %608 : vector<16x128xf32>
    %610 = arith.addf %584, %609 : vector<16x128xf32>
    %c137 = arith.constant 137 : index
    %611 = memref.load %arg2[%c137] : memref<150xf32, #tpu.memory_space<smem>>
    %612 = vector.broadcast %611 : f32 to vector<16x128xf32>
    %613 = arith.mulf %602, %612 : vector<16x128xf32>
    %614 = arith.addf %588, %613 : vector<16x128xf32>
    %615 = arith.mulf %575, %15 : vector<16x128xf32>
    %c138 = arith.constant 138 : index
    %616 = memref.load %arg2[%c138] : memref<150xf32, #tpu.memory_space<smem>>
    %617 = vector.broadcast %616 : f32 to vector<16x128xf32>
    %618 = arith.mulf %615, %617 : vector<16x128xf32>
    %619 = arith.addf %593, %618 : vector<16x128xf32>
    %c139 = arith.constant 139 : index
    %620 = memref.load %arg2[%c139] : memref<150xf32, #tpu.memory_space<smem>>
    %621 = vector.broadcast %620 : f32 to vector<16x128xf32>
    %622 = arith.mulf %615, %621 : vector<16x128xf32>
    %623 = arith.addf %597, %622 : vector<16x128xf32>
    %c140 = arith.constant 140 : index
    %624 = memref.load %arg2[%c140] : memref<150xf32, #tpu.memory_space<smem>>
    %625 = vector.broadcast %624 : f32 to vector<16x128xf32>
    %626 = arith.mulf %615, %625 : vector<16x128xf32>
    %627 = arith.addf %601, %626 : vector<16x128xf32>
    %628 = arith.mulf %575, %17 : vector<16x128xf32>
    %c141 = arith.constant 141 : index
    %629 = memref.load %arg2[%c141] : memref<150xf32, #tpu.memory_space<smem>>
    %630 = vector.broadcast %629 : f32 to vector<16x128xf32>
    %631 = arith.mulf %628, %630 : vector<16x128xf32>
    %632 = arith.addf %606, %631 : vector<16x128xf32>
    %c142 = arith.constant 142 : index
    %633 = memref.load %arg2[%c142] : memref<150xf32, #tpu.memory_space<smem>>
    %634 = vector.broadcast %633 : f32 to vector<16x128xf32>
    %635 = arith.mulf %628, %634 : vector<16x128xf32>
    %636 = arith.addf %610, %635 : vector<16x128xf32>
    %c143 = arith.constant 143 : index
    %637 = memref.load %arg2[%c143] : memref<150xf32, #tpu.memory_space<smem>>
    %638 = vector.broadcast %637 : f32 to vector<16x128xf32>
    %639 = arith.mulf %628, %638 : vector<16x128xf32>
    %640 = arith.addf %614, %639 : vector<16x128xf32>
    %641 = arith.mulf %575, %19 : vector<16x128xf32>
    %c144 = arith.constant 144 : index
    %642 = memref.load %arg2[%c144] : memref<150xf32, #tpu.memory_space<smem>>
    %643 = vector.broadcast %642 : f32 to vector<16x128xf32>
    %644 = arith.mulf %641, %643 : vector<16x128xf32>
    %645 = arith.addf %619, %644 : vector<16x128xf32>
    %c145 = arith.constant 145 : index
    %646 = memref.load %arg2[%c145] : memref<150xf32, #tpu.memory_space<smem>>
    %647 = vector.broadcast %646 : f32 to vector<16x128xf32>
    %648 = arith.mulf %641, %647 : vector<16x128xf32>
    %649 = arith.addf %623, %648 : vector<16x128xf32>
    %c146 = arith.constant 146 : index
    %650 = memref.load %arg2[%c146] : memref<150xf32, #tpu.memory_space<smem>>
    %651 = vector.broadcast %650 : f32 to vector<16x128xf32>
    %652 = arith.mulf %641, %651 : vector<16x128xf32>
    %653 = arith.addf %627, %652 : vector<16x128xf32>
    %654 = arith.mulf %575, %21 : vector<16x128xf32>
    %c147 = arith.constant 147 : index
    %655 = memref.load %arg2[%c147] : memref<150xf32, #tpu.memory_space<smem>>
    %656 = vector.broadcast %655 : f32 to vector<16x128xf32>
    %657 = arith.mulf %654, %656 : vector<16x128xf32>
    %658 = arith.addf %632, %657 : vector<16x128xf32>
    %c148 = arith.constant 148 : index
    %659 = memref.load %arg2[%c148] : memref<150xf32, #tpu.memory_space<smem>>
    %660 = vector.broadcast %659 : f32 to vector<16x128xf32>
    %661 = arith.mulf %654, %660 : vector<16x128xf32>
    %662 = arith.addf %636, %661 : vector<16x128xf32>
    %c149 = arith.constant 149 : index
    %663 = memref.load %arg2[%c149] : memref<150xf32, #tpu.memory_space<smem>>
    %664 = vector.broadcast %663 : f32 to vector<16x128xf32>
    %665 = arith.mulf %654, %664 : vector<16x128xf32>
    %666 = arith.addf %640, %665 : vector<16x128xf32>
    %667 = arith.addf %645, %658 : vector<16x128xf32>
    %c0_3 = arith.constant 0 : index
    %668 = memref.load %arg2[%c0_3] : memref<150xf32, #tpu.memory_space<smem>>
    %c0_4 = arith.constant 0 : index
    %669 = memref.load %arg3[%c0_4] : memref<3xf32, #tpu.memory_space<smem>>
    %670 = arith.addf %668, %669 : f32
    %671 = vector.broadcast %670 : f32 to vector<16x128xf32>
    %672 = arith.addf %667, %671 : vector<16x128xf32>
    %c0_5 = arith.constant 0 : index
    %673 = arith.index_cast %1 : i32 to index
    %c0_6 = arith.constant 0 : index
    %674 = vector.load %arg4[%c0_5, %673, %c0_6] : memref<3x16x128xf32, #tpu.memory_space<vmem>>, vector<1x16x128xf32>
    %675 = vector.shape_cast %674 : vector<1x16x128xf32> to vector<16x128xf32>
    %676 = vector.shape_cast %672 : vector<16x128xf32> to vector<1x16x128xf32>
    tpu.vector_store %arg4[%c0_5, %673, %c0_6], %676 {strides = array<i32>} : memref<3x16x128xf32, #tpu.memory_space<vmem>>, vector<1x16x128xf32>,
    %677 = arith.addf %649, %662 : vector<16x128xf32>
    %c1_7 = arith.constant 1 : index
    %678 = memref.load %arg2[%c1_7] : memref<150xf32, #tpu.memory_space<smem>>
    %c1_8 = arith.constant 1 : index
    %679 = memref.load %arg3[%c1_8] : memref<3xf32, #tpu.memory_space<smem>>
    %680 = arith.addf %678, %679 : f32
    %681 = vector.broadcast %680 : f32 to vector<16x128xf32>
    %682 = arith.addf %677, %681 : vector<16x128xf32>
    %c1_9 = arith.constant 1 : index
    %683 = arith.index_cast %1 : i32 to index
    %c0_10 = arith.constant 0 : index
    %684 = vector.load %arg4[%c1_9, %683, %c0_10] : memref<3x16x128xf32, #tpu.memory_space<vmem>>, vector<1x16x128xf32>
    %685 = vector.shape_cast %684 : vector<1x16x128xf32> to vector<16x128xf32>
    %686 = vector.shape_cast %682 : vector<16x128xf32> to vector<1x16x128xf32>
    tpu.vector_store %arg4[%c1_9, %683, %c0_10], %686 {strides = array<i32>} : memref<3x16x128xf32, #tpu.memory_space<vmem>>, vector<1x16x128xf32>,
    %687 = arith.addf %653, %666 : vector<16x128xf32>
    %c2 = arith.constant 2 : index
    %688 = memref.load %arg2[%c2] : memref<150xf32, #tpu.memory_space<smem>>
    %c2_11 = arith.constant 2 : index
    %689 = memref.load %arg3[%c2_11] : memref<3xf32, #tpu.memory_space<smem>>
    %690 = arith.addf %688, %689 : f32
    %691 = vector.broadcast %690 : f32 to vector<16x128xf32>
    %692 = arith.addf %687, %691 : vector<16x128xf32>
    %c2_12 = arith.constant 2 : index
    %693 = arith.index_cast %1 : i32 to index
    %c0_13 = arith.constant 0 : index
    %694 = vector.load %arg4[%c2_12, %693, %c0_13] : memref<3x16x128xf32, #tpu.memory_space<vmem>>, vector<1x16x128xf32>
    %695 = vector.shape_cast %694 : vector<1x16x128xf32> to vector<16x128xf32>
    %696 = vector.shape_cast %692 : vector<16x128xf32> to vector<1x16x128xf32>
    tpu.vector_store %arg4[%c2_12, %693, %c0_13], %696 {strides = array<i32>} : memref<3x16x128xf32, #tpu.memory_space<vmem>>, vector<1x16x128xf32>,
    %c1_i32 = arith.constant 1 : i32
    return
  }
  func.func @transform_0(%arg0: i32) -> (i32, i32, i32) {
    %c0_i32 = arith.constant 0 : i32
    %c0_i32_0 = arith.constant 0 : i32
    %c0_i32_1 = arith.constant 0 : i32
    return %c0_i32, %arg0, %c0_i32_0 : i32, i32, i32
  }
  func.func @transform_1(%arg0: i32) -> i32 {
    %c0_i32 = arith.constant 0 : i32
    %c0_i32_0 = arith.constant 0 : i32
    return %c0_i32 : i32
  }
  func.func @transform_2(%arg0: i32) -> i32 {
    %c0_i32 = arith.constant 0 : i32
    %c0_i32_0 = arith.constant 0 : i32
    return %c0_i32 : i32
  }
  func.func @transform_3(%arg0: i32) -> (i32, i32, i32) {
    %c0_i32 = arith.constant 0 : i32
    %c0_i32_0 = arith.constant 0 : i32
    %c0_i32_1 = arith.constant 0 : i32
    return %c0_i32, %arg0, %c0_i32_0 : i32, i32, i32
  }
}

</mosaic_0001>

<bundles_post_ra>
// kernel: cheb_fcn2d_forward.1
= control target key start
LH: loop header
LB: loop body
LE: loop exit
PB: predicated region body
PF: predicated region fallthrough
CT: control target
= control target key end

     0   :  { %8 = vsyncpa [#allocation3], 0  ;;  %s2157_s0 = inlined_call_operand.vmem [shape: f32[2,16,128], index: 0, kind: input, shape index: {}]   ;;  %s2158_s1 = inlined_call_operand.vmem [shape: f32[150], index: 1, kind: input, shape index: {}]   ;;  %s2159_s2 = inlined_call_operand.vmem [shape: f32[3], index: 2, kind: input, shape index: {}]   ;;  %s2160_s3 = inlined_call_operand.vmem [shape: f32[3,16,128], index: 3, kind: output, shape index: {}]  }
   0x1   :  { %s18_s14 = sshll.u32 %s2158_s1, 4  ;;  %s19_s14 = int_to_ptr.vmem [resolvable:$true] %s18_s14 }
   0x2   :  { %9 = vsyncpa [#allocation5], 0  ;;  %s28_s17 = sshll.u32 %s2159_s2, 4  ;;  %s1272_s18 = scalar_lea.vmem %s19_s14, 32  ;;  %s29_s17 = int_to_ptr.vmem [resolvable:$true] %s28_s17 }
   0x3   :  { %p1273_p0 = scmp.ne.s32.totalorder %s19_s14, %s1272_s18  ;;  %p1277_p1 = scmp.lt.s32.totalorder %s19_s14, %s19_s14 }
   0x4   :  { %p1278_p2 = scmp.lt.s32.totalorder %s1272_s18, %s1272_s18 }
   0x6   :  { %p1279_p3 = por %p1278_p2, %p1277_p1 }
   0x8   :  { %p1280_p4 = pnand %p1279_p3, %p1273_p0 }
   0xa   :  { %1283 = shalt.err (!%p1280_p4)
}
   0xb   :  { %s1300_s19 = smov [#allocation2]   ;;  %s1284_s20 = scalar_lea.vmem %s29_s17, 16 }
   0xc   :  { %21 = dma.vmem_to_smem %s19_s14, 32, %s1300_s19, [#allocation3]  }
   0xd   :  { %p1285_p5 = scmp.ne.s32.totalorder %s29_s17, %s1284_s20  ;;  %p1289_p6 = scmp.lt.s32.totalorder %s29_s17, %s29_s17 }
   0xe   :  { %p1290_p7 = scmp.lt.s32.totalorder %s1284_s20, %s1284_s20 }
  0x10   :  { %p1291_p8 = por %p1290_p7, %p1289_p6 }
  0x12   :  { %p1292_p9 = pnand %p1291_p8, %p1285_p5 }
  0x14   :  { %1295 = shalt.err (!%p1292_p9)
}
  0x15   :  { %s1301_s1 = smov [#allocation4]  }
  0x16   :  { %31 = dma.vmem_to_smem %s29_s17, 16, %s1301_s1, [#allocation5]  }
  0x17   :  { %1296 = dma.done.wait [#allocation3], 32  }
  0x18   :  { %1297 = vsyncadd [#allocation3], 4294967264 }
  0x19   :  { %1298 = dma.done.wait [#allocation5], 16  }
  0x1a   :  { %1299 = vsyncadd [#allocation5], 4294967280 }
  0x1b   :  { %38 = sfence }
  0x1c   :  { %v1331_v0 = vld [vmem:[%s2157_s0] sm:$0xff]  ;;  %v1336_v1 = vld [vmem:[%s2157_s0 + $0x8] sm:$0xff]  ;;  %v1341_v2 = vld [vmem:[%s2157_s0 + $0x10] sm:$0xff]  ;;  %s1111_s26 = sld [smem:[#allocation2 + $0x3]] }
  0x1d   :  { %v1346_v3 = vld [vmem:[%s2157_s0 + $0x18] sm:$0xff]  ;;  %v1350_v4 = vadd.f32 %v1341_v2, %v1341_v2  ;;  %v1354_v5 = vadd.f32 %v1331_v0, %v1331_v0  ;;  %v1358_v6 = vadd.f32 %v1336_v1, %v1336_v1  ;;  %s1112_s29 = sld [smem:[#allocation2 + $0x4]]  ;;  %v73_v8 = vmul.f32 %v1341_v2, %v1331_v0 }
  0x1e   :  { %v1362_v7 = vadd.f32 %v1346_v3, %v1346_v3  ;;  %s1113_s30 = sld [smem:[#allocation2 + $0x5]]  ;;  %v74_v10 = vmul.f32 %v1346_v3, %v1336_v1 }
  0x1f   :  { %v47_v9 = vmul.f32 %v1341_v2, %v1350_v4  ;;  %s1370_s4 = sld [smem:[#allocation2 + $0x6]]  ;;  %v201_v11 = vmul.f32 %v1354_v5, %v1331_v0  ;;  %v202_v12 = vmul.f32 %v1358_v6, %v1336_v1 }
  0x20   :  { %v48_v13 = vmul.f32 %v1346_v3, %v1362_v7  ;;  %s1378_s5 = sld [smem:[#allocation2 + $0x7]] }
  0x21   :  { %v1380_v14 = vadd.f32 -1.0, %v47_v9  ;;  %s1382_s6 = sld [smem:[#allocation2 + $0x8]]  ;;  %v1388_v17 = vadd.f32 -1.0, %v201_v11  ;;  %v1390_v18 = vadd.f32 -1.0, %v202_v12 }
  0x22   :  { %v1384_v15 = vadd.f32 -1.0, %v48_v13  ;;  %v76_v16 = vstv %s1111_s26  ;;  %s1386_s7 = sld [smem:[#allocation2 + $0x9]] }
  0x23   :  { %v51_v19 = vmul.f32 %v1380_v14, %v1350_v4  ;;  %v77_v20 = vmul.f32 %v76_v16, %v73_v8  ;;  %v78_v21 = vmul.f32 %v76_v16, %v74_v10  ;;  %v80_v22 = vstv %s1112_s29  ;;  %s1394_s8 = sld [smem:[#allocation2 + $0xa]] }
  0x24   :  { %v52_v23 = vmul.f32 %v1384_v15, %v1362_v7  ;;  %v81_v24 = vmul.f32 %v80_v22, %v73_v8  ;;  %v82_v25 = vmul.f32 %v80_v22, %v74_v10  ;;  %v84_v26 = vstv %s1113_s30  ;;  %s1398_s9 = sld [smem:[#allocation2 + $0xb]] }
  0x25   :  { %v1401_v27 = vsub.f32 %v51_v19, %v1341_v2  ;;  %v85_v28 = vmul.f32 %v84_v26, %v73_v8  ;;  %v86_v29 = vmul.f32 %v84_v26, %v74_v10  ;;  %v87_v30 = vmul.f32 %v1380_v14, %v1331_v0  ;;  %s1412_s10 = sld [smem:[#allocation2 + $0xc]] }
  0x26   :  { %v1406_v31 = vsub.f32 %v52_v23, %v1346_v3  ;;  %v88_v32 = vmul.f32 %v1384_v15, %v1336_v1  ;;  %v90_v33 = vstv %s1370_s4  ;;  %v94_v34 = vstv %s1378_s5  ;;  %s1417_s11 = sld [smem:[#allocation2 + $0xd]] }
  0x27   :  { %v55_v35 = vmul.f32 %v1401_v27, %v1350_v4  ;;  %v91_v36 = vmul.f32 %v90_v33, %v87_v30  ;;  %v95_v37 = vmul.f32 %v94_v34, %v87_v30  ;;  %v98_v38 = vstv %s1382_s6  ;;  %s1421_s12 = sld [smem:[#allocation2 + $0xe]] }
  0x28   :  { %v56_v39 = vmul.f32 %v1406_v31, %v1362_v7  ;;  %v92_v40 = vmul.f32 %v90_v33, %v88_v32  ;;  %v96_v41 = vmul.f32 %v94_v34, %v88_v32  ;;  %v99_v42 = vmul.f32 %v98_v38, %v87_v30  ;;  %s1440_s13 = sld [smem:[#allocation2 + $0xf]] }
  0x29   :  { %v1424_v43 = vsub.f32 %v55_v35, %v1380_v14  ;;  %v100_v44 = vmul.f32 %v98_v38, %v88_v32  ;;  %v101_v45 = vmul.f32 %v1401_v27, %v1331_v0  ;;  %v102_v46 = vmul.f32 %v1406_v31, %v1336_v1  ;;  %s1445_s14 = sld [smem:[#allocation2 + $0x10]] }
  0x2a   :  { %v1431_v47 = vsub.f32 %v56_v39, %v1384_v15  ;;  %v104_v48 = vstv %s1386_s7  ;;  %v110_v49 = vstv %s1394_s8  ;;  %v116_v50 = vstv %s1398_s9  ;;  %s1450_s15 = sld [smem:[#allocation2 + $0x11]] }
  0x2b   :  { %v59_v51 = vmul.f32 %v1424_v43, %v1350_v4  ;;  %v105_v52 = vmul.f32 %v104_v48, %v101_v45  ;;  %v106_v53 = vmul.f32 %v104_v48, %v102_v46  ;;  %v111_v54 = vmul.f32 %v110_v49, %v101_v45  ;;  %s1465_s16 = sld [smem:[#allocation2 + $0x12]] }
  0x2c   :  { %v60_v55 = vmul.f32 %v1431_v47, %v1362_v7  ;;  %v112_v56 = vmul.f32 %v110_v49, %v102_v46  ;;  %v117_v57 = vmul.f32 %v116_v50, %v101_v45  ;;  %v118_v58 = vmul.f32 %v116_v50, %v102_v46  ;;  %s1470_s17 = sld [smem:[#allocation2 + $0x13]] }
  0x2d   :  { %v1443_v59 = vsub.f32 %v59_v51, %v1401_v27  ;;  %v107_v60 = vadd.f32 %v105_v52, %v77_v20  ;;  %v108_v61 = vadd.f32 %v106_v53, %v78_v21  ;;  %v113_v62 = vadd.f32 %v111_v54, %v81_v24  ;;  %s1475_s18 = sld [smem:[#allocation2 + $0x14]] }
  0x2e   :  { %v1448_v63 = vsub.f32 %v60_v55, %v1406_v31  ;;  %v114_v8 = vadd.f32 %v112_v56, %v82_v25  ;;  %v119_v9 = vadd.f32 %v117_v57, %v85_v28  ;;  %v120_v10 = vadd.f32 %v118_v58, %v86_v29  ;;  %s1481_s19 = sld [smem:[#allocation2 + $0x15]] }
  0x2f   :  { %v63_v11 = vmul.f32 %v1443_v59, %v1350_v4  ;;  %v121_v12 = vmul.f32 %v1424_v43, %v1331_v0  ;;  %v122_v13 = vmul.f32 %v1431_v47, %v1336_v1  ;;  %v124_v16 = vstv %s1412_s10  ;;  %s1494_s20 = sld [smem:[#allocation2 + $0x16]] }
  0x30   :  { %v64_v19 = vmul.f32 %v1448_v63, %v1362_v7  ;;  %v130_v20 = vstv %s1417_s11  ;;  %v136_v21 = vstv %s1421_s12  ;;  %v141_v22 = vmul.f32 %v1443_v59, %v1331_v0  ;;  %s1496_s1 = sld [smem:[#allocation2 + $0x17]] }
  0x31   :  { %v1468_v23 = vsub.f32 %v63_v11, %v1424_v43  ;;  %v125_v24 = vmul.f32 %v124_v16, %v121_v12  ;;  %v126_v25 = vmul.f32 %v124_v16, %v122_v13  ;;  %v131_v26 = vmul.f32 %v130_v20, %v121_v12  ;;  %s1502_s2 = sld [smem:[#allocation2 + $0x18]] }
  0x32   :  { %v1473_v28 = vsub.f32 %v64_v19, %v1431_v47  ;;  %v132_v29 = vmul.f32 %v130_v20, %v122_v13  ;;  %v137_v30 = vmul.f32 %v136_v21, %v121_v12  ;;  %v138_v32 = vmul.f32 %v136_v21, %v122_v13  ;;  %s1504_s21 = sld [smem:[#allocation2 + $0x19]] }
  0x33   :  { %v67_v33 = vmul.f32 %v1468_v23, %v1350_v4  ;;  %v127_v34 = vadd.f32 %v125_v24, %v91_v36  ;;  %v128_v35 = vadd.f32 %v126_v25, %v92_v40  ;;  %v133_v38 = vadd.f32 %v131_v26, %v95_v37  ;;  %s1511_s22 = sld [smem:[#allocation2 + $0x1a]] }
  0x34   :  { %v68_v39 = vmul.f32 %v1473_v28, %v1362_v7  ;;  %v134_v45 = vadd.f32 %v132_v29, %v96_v41  ;;  %v139_v46 = vadd.f32 %v137_v30, %v99_v42  ;;  %v140_v48 = vadd.f32 %v138_v32, %v100_v44  ;;  %s1516_s23 = sld [smem:[#allocation2 + $0x1b]] }
  0x35   :  { %v1484_v49 = vsub.f32 %v67_v33, %v1443_v59  ;;  %v142_v50 = vmul.f32 %v1448_v63, %v1336_v1  ;;  %v144_v51 = vstv %s1440_s13  ;;  %v150_v4 = vstv %s1445_s14  ;;  %s1518_s24 = sld [smem:[#allocation2 + $0x1c]] }
  0x36   :  { %v1491_v36 = vsub.f32 %v68_v39, %v1448_v63  ;;  %v145_v37 = vmul.f32 %v144_v51, %v141_v22  ;;  %v151_v40 = vmul.f32 %v150_v4, %v141_v22  ;;  %v156_v52 = vstv %s1450_s15  ;;  %s1520_s25 = sld [smem:[#allocation2 + $0x1d]] }
  0x37   :  { %v146_v7 = vmul.f32 %v144_v51, %v142_v50  ;;  %v152_v41 = vmul.f32 %v150_v4, %v142_v50  ;;  %v157_v42 = vmul.f32 %v156_v52, %v141_v22  ;;  %v158_v44 = vmul.f32 %v156_v52, %v142_v50  ;;  %s1530_s26 = sld [smem:[#allocation2 + $0x1e]] }
  0x38   :  { %v147_v53 = vadd.f32 %v145_v37, %v107_v60  ;;  %v153_v54 = vadd.f32 %v151_v40, %v113_v62  ;;  %v161_v55 = vmul.f32 %v1468_v23, %v1331_v0  ;;  %v162_v56 = vmul.f32 %v1473_v28, %v1336_v1  ;;  %s1532_s27 = sld [smem:[#allocation2 + $0x1f]] }
  0x39   :  { %v148_v57 = vadd.f32 %v146_v7, %v108_v61  ;;  %v154_v58 = vadd.f32 %v152_v41, %v114_v8  ;;  %v159_v11 = vadd.f32 %v157_v42, %v119_v9  ;;  %v160_v12 = vadd.f32 %v158_v44, %v120_v10  ;;  %s1534_s28 = sld [smem:[#allocation2 + $0x20]] }
  0x3a   :  { %v164_v13 = vstv %s1465_s16  ;;  %v170_v16 = vstv %s1470_s17  ;;  %v176_v19 = vstv %s1475_s18  ;;  %v181_v60 = vmul.f32 %v1484_v49, %v1331_v0  ;;  %s1539_s29 = sld [smem:[#allocation2 + $0x21]] }
  0x3b   :  { %v165_v62 = vmul.f32 %v164_v13, %v161_v55  ;;  %v166_v20 = vmul.f32 %v164_v13, %v162_v56  ;;  %v171_v21 = vmul.f32 %v170_v16, %v161_v55  ;;  %v172_v22 = vmul.f32 %v170_v16, %v162_v56  ;;  %s1546_s30 = sld [smem:[#allocation2 + $0x22]] }
  0x3c   :  { %v177_v61 = vmul.f32 %v176_v19, %v161_v55  ;;  %v178_v8 = vmul.f32 %v176_v19, %v162_v56  ;;  %v182_v9 = vmul.f32 %v1491_v36, %v1336_v1  ;;  %v184_v10 = vstv %s1481_s19  ;;  %s1548_s4 = sld [smem:[#allocation2 + $0x23]] }
  0x3d   :  { %v167_v24 = vadd.f32 %v165_v62, %v127_v34  ;;  %v168_v25 = vadd.f32 %v166_v20, %v128_v35  ;;  %v173_v26 = vadd.f32 %v171_v21, %v133_v38  ;;  %v174_v29 = vadd.f32 %v172_v22, %v134_v45  ;;  %s1554_s5 = sld [smem:[#allocation2 + $0x24]] }
  0x3e   :  { %v179_v30 = vadd.f32 %v177_v61, %v139_v46  ;;  %v180_v32 = vadd.f32 %v178_v8, %v140_v48  ;;  %v185_v33 = vmul.f32 %v184_v10, %v181_v60  ;;  %v186_v39 = vmul.f32 %v184_v10, %v182_v9  ;;  %s1556_s6 = sld [smem:[#allocation2 + $0x25]] }
  0x3f   :  { %v190_v50 = vstv %s1494_s20  ;;  %v196_v51 = vstv %s1496_s1  ;;  %v205_v4 = vmul.f32 %v1388_v17, %v1341_v2  ;;  %v206_v34 = vmul.f32 %v1390_v18, %v1346_v3  ;;  %s1563_s7 = sld [smem:[#allocation2 + $0x26]] }
  0x40   :  { %v187_v35 = vadd.f32 %v185_v33, %v147_v53  ;;  %v188_v38 = vadd.f32 %v186_v39, %v148_v57  ;;  %v191_v45 = vmul.f32 %v190_v50, %v181_v60  ;;  %v192_v37 = vmul.f32 %v190_v50, %v182_v9  ;;  %s1568_s8 = sld [smem:[#allocation2 + $0x27]] }
  0x41   :  { %v197_v40 = vmul.f32 %v196_v51, %v181_v60  ;;  %v198_v46 = vmul.f32 %v196_v51, %v182_v9  ;;  %v208_v48 = vstv %s1502_s2  ;;  %v214_v52 = vstv %s1504_s21  ;;  %s1570_s9 = sld [smem:[#allocation2 + $0x28]] }
  0x42   :  { %v193_v7 = vadd.f32 %v191_v45, %v153_v54  ;;  %v194_v41 = vadd.f32 %v192_v37, %v154_v58  ;;  %v209_v42 = vmul.f32 %v208_v48, %v205_v4  ;;  %v210_v44 = vmul.f32 %v208_v48, %v206_v34  ;;  %s1572_s10 = sld [smem:[#allocation2 + $0x29]] }
  0x43   :  { %v199_v55 = vadd.f32 %v197_v40, %v159_v11  ;;  %v200_v53 = vadd.f32 %v198_v46, %v160_v12  ;;  %v215_v56 = vmul.f32 %v214_v52, %v205_v4  ;;  %v216_v57 = vmul.f32 %v214_v52, %v206_v34  ;;  %s1582_s11 = sld [smem:[#allocation2 + $0x2a]] }
  0x44   :  { %v211_v13 = vadd.f32 %v209_v42, %v167_v24  ;;  %v212_v16 = vadd.f32 %v210_v44, %v168_v25  ;;  %v220_v19 = vstv %s1511_s22  ;;  %v225_v54 = vmul.f32 %v1388_v17, %v1380_v14  ;;  %s1584_s12 = sld [smem:[#allocation2 + $0x2b]] }
  0x45   :  { %v217_v58 = vadd.f32 %v215_v56, %v173_v26  ;;  %v218_v60 = vadd.f32 %v216_v57, %v174_v29  ;;  %v221_v62 = vmul.f32 %v220_v19, %v205_v4  ;;  %v222_v20 = vmul.f32 %v220_v19, %v206_v34  ;;  %s1586_s13 = sld [smem:[#allocation2 + $0x2c]] }
  0x46   :  { %v226_v11 = vmul.f32 %v1390_v18, %v1384_v15  ;;  %v228_v12 = vstv %s1516_s23  ;;  %v234_v21 = vstv %s1518_s24  ;;  %v240_v22 = vstv %s1520_s25  ;;  %s1591_s14 = sld [smem:[#allocation2 + $0x2d]] }
  0x47   :  { %v223_v61 = vadd.f32 %v221_v62, %v179_v30  ;;  %v224_v8 = vadd.f32 %v222_v20, %v180_v32  ;;  %v229_v9 = vmul.f32 %v228_v12, %v225_v54  ;;  %v235_v10 = vmul.f32 %v234_v21, %v225_v54  ;;  %s1598_s15 = sld [smem:[#allocation2 + $0x2e]] }
  0x48   :  { %v230_v24 = vmul.f32 %v228_v12, %v226_v11  ;;  %v236_v25 = vmul.f32 %v234_v21, %v226_v11  ;;  %v241_v26 = vmul.f32 %v240_v22, %v225_v54  ;;  %v242_v29 = vmul.f32 %v240_v22, %v226_v11  ;;  %s1600_s16 = sld [smem:[#allocation2 + $0x2f]] }
  0x49   :  { %v231_v33 = vadd.f32 %v229_v9, %v187_v35  ;;  %v237_v39 = vadd.f32 %v235_v10, %v193_v7  ;;  %v245_v50 = vmul.f32 %v1388_v17, %v1401_v27  ;;  %v246_v30 = vmul.f32 %v1390_v18, %v1406_v31  ;;  %s1602_s17 = sld [smem:[#allocation2 + $0x30]] }
  0x4a   :  { %v232_v32 = vadd.f32 %v230_v24, %v188_v38  ;;  %v238_v51 = vadd.f32 %v236_v25, %v194_v41  ;;  %v243_v4 = vadd.f32 %v241_v26, %v199_v55  ;;  %v244_v34 = vadd.f32 %v242_v29, %v200_v53  ;;  %s1608_s18 = sld [smem:[#allocation2 + $0x31]] }
  0x4b   :  { %v248_v45 = vstv %s1530_s26  ;;  %v254_v37 = vstv %s1532_s27  ;;  %v260_v40 = vstv %s1534_s28  ;;  %v265_v35 = vmul.f32 %v1388_v17, %v1424_v43  ;;  %s1610_s19 = sld [smem:[#allocation2 + $0x32]] }
  0x4c   :  { %v249_v46 = vmul.f32 %v248_v45, %v245_v50  ;;  %v250_v48 = vmul.f32 %v248_v45, %v246_v30  ;;  %v255_v52 = vmul.f32 %v254_v37, %v245_v50  ;;  %v256_v7 = vmul.f32 %v254_v37, %v246_v30  ;;  %s1627_s20 = sld [smem:[#allocation2 + $0x33]] }
  0x4d   :  { %v261_v38 = vmul.f32 %v260_v40, %v245_v50  ;;  %v262_v41 = vmul.f32 %v260_v40, %v246_v30  ;;  %v266_v42 = vmul.f32 %v1390_v18, %v1431_v47  ;;  %v268_v44 = vstv %s1539_s29  ;;  %s1634_s1 = sld [smem:[#allocation2 + $0x34]] }
  0x4e   :  { %v251_v55 = vadd.f32 %v249_v46, %v211_v13  ;;  %v252_v53 = vadd.f32 %v250_v48, %v212_v16  ;;  %v257_v56 = vadd.f32 %v255_v52, %v217_v58  ;;  %v258_v57 = vadd.f32 %v256_v7, %v218_v60  ;;  %s1638_s2 = sld [smem:[#allocation2 + $0x35]] }
  0x4f   :  { %v263_v19 = vadd.f32 %v261_v38, %v223_v61  ;;  %v264_v54 = vadd.f32 %v262_v41, %v224_v8  ;;  %v269_v62 = vmul.f32 %v268_v44, %v265_v35  ;;  %v270_v20 = vmul.f32 %v268_v44, %v266_v42  ;;  %s1645_s21 = sld [smem:[#allocation2 + $0x36]] }
  0x50   :  { %v274_v11 = vstv %s1546_s30  ;;  %v280_v12 = vstv %s1548_s4  ;;  %v285_v21 = vmul.f32 %v1388_v17, %v1443_v59  ;;  %v286_v13 = vmul.f32 %v1390_v18, %v1448_v63  ;;  %s1647_s22 = sld [smem:[#allocation2 + $0x37]] }
  0x51   :  { %v271_v16 = vadd.f32 %v269_v62, %v231_v33  ;;  %v272_v58 = vadd.f32 %v270_v20, %v232_v32  ;;  %v275_v60 = vmul.f32 %v274_v11, %v265_v35  ;;  %v276_v22 = vmul.f32 %v274_v11, %v266_v42  ;;  %s1649_s23 = sld [smem:[#allocation2 + $0x38]] }
  0x52   :  { %v281_v9 = vmul.f32 %v280_v12, %v265_v35  ;;  %v282_v61 = vmul.f32 %v280_v12, %v266_v42  ;;  %v288_v8 = vstv %s1554_s5  ;;  %v294_v10 = vstv %s1556_s6  ;;  %s1653_s24 = sld [smem:[#allocation2 + $0x39]] }
  0x53   :  { %v277_v24 = vadd.f32 %v275_v60, %v237_v39  ;;  %v278_v25 = vadd.f32 %v276_v22, %v238_v51  ;;  %v289_v26 = vmul.f32 %v288_v8, %v285_v21  ;;  %v290_v29 = vmul.f32 %v288_v8, %v286_v13  ;;  %s1660_s25 = sld [smem:[#allocation2 + $0x3a]] }
  0x54   :  { %v283_v50 = vadd.f32 %v281_v9, %v243_v4  ;;  %v284_v33 = vadd.f32 %v282_v61, %v244_v34  ;;  %v295_v30 = vmul.f32 %v294_v10, %v285_v21  ;;  %v296_v32 = vmul.f32 %v294_v10, %v286_v13  ;;  %s1662_s26 = sld [smem:[#allocation2 + $0x3b]] }
  0x55   :  { %v291_v45 = vadd.f32 %v289_v26, %v251_v55  ;;  %v292_v37 = vadd.f32 %v290_v29, %v252_v53  ;;  %v300_v40 = vstv %s1563_s7  ;;  %v305_v39 = vmul.f32 %v1388_v17, %v1468_v23  ;;  %s1668_s27 = sld [smem:[#allocation2 + $0x3c]] }
  0x56   :  { %v297_v51 = vadd.f32 %v295_v30, %v257_v56  ;;  %v298_v35 = vadd.f32 %v296_v32, %v258_v57  ;;  %v301_v46 = vmul.f32 %v300_v40, %v285_v21  ;;  %v302_v48 = vmul.f32 %v300_v40, %v286_v13  ;;  %s1670_s28 = sld [smem:[#allocation2 + $0x3d]] }
  0x57   :  { %v306_v4 = vmul.f32 %v1390_v18, %v1473_v28  ;;  %v308_v34 = vstv %s1568_s8  ;;  %v314_v52 = vstv %s1570_s9  ;;  %v320_v7 = vstv %s1572_s10  ;;  %s1677_s29 = sld [smem:[#allocation2 + $0x3e]] }
  0x58   :  { %v303_v38 = vadd.f32 %v301_v46, %v263_v19  ;;  %v304_v41 = vadd.f32 %v302_v48, %v264_v54  ;;  %v309_v42 = vmul.f32 %v308_v34, %v305_v39  ;;  %v315_v44 = vmul.f32 %v314_v52, %v305_v39  ;;  %s1682_s30 = sld [smem:[#allocation2 + $0x3f]] }
  0x59   :  { %v310_v55 = vmul.f32 %v308_v34, %v306_v4  ;;  %v316_v53 = vmul.f32 %v314_v52, %v306_v4  ;;  %v321_v56 = vmul.f32 %v320_v7, %v305_v39  ;;  %v322_v57 = vmul.f32 %v320_v7, %v306_v4  ;;  %s1684_s4 = sld [smem:[#allocation2 + $0x40]] }
  0x5a   :  { %v311_v62 = vadd.f32 %v309_v42, %v271_v16  ;;  %v317_v20 = vadd.f32 %v315_v44, %v277_v24  ;;  %v325_v11 = vmul.f32 %v1388_v17, %v1484_v49  ;;  %v326_v19 = vmul.f32 %v1390_v18, %v1491_v36  ;;  %s1686_s5 = sld [smem:[#allocation2 + $0x41]] }
  0x5b   :  { %v312_v54 = vadd.f32 %v310_v55, %v272_v58  ;;  %v318_v12 = vadd.f32 %v316_v53, %v278_v25  ;;  %v323_v21 = vadd.f32 %v321_v56, %v283_v50  ;;  %v324_v13 = vadd.f32 %v322_v57, %v284_v33  ;;  %s1694_s6 = sld [smem:[#allocation2 + $0x42]] }
  0x5c   :  { %v328_v60 = vstv %s1582_s11  ;;  %v334_v22 = vstv %s1584_s12  ;;  %v340_v9 = vstv %s1586_s13  ;;  %v345_v16 = vmul.f32 %v1388_v17, %v1354_v5  ;;  %s1696_s7 = sld [smem:[#allocation2 + $0x43]] }
  0x5d   :  { %v329_v61 = vmul.f32 %v328_v60, %v325_v11  ;;  %v330_v8 = vmul.f32 %v328_v60, %v326_v19  ;;  %v335_v10 = vmul.f32 %v334_v22, %v325_v11  ;;  %v336_v24 = vmul.f32 %v334_v22, %v326_v19  ;;  %s1700_s8 = sld [smem:[#allocation2 + $0x44]] }
  0x5e   :  { %v341_v26 = vmul.f32 %v340_v9, %v325_v11  ;;  %v342_v58 = vmul.f32 %v340_v9, %v326_v19  ;;  %v346_v25 = vmul.f32 %v1390_v18, %v1358_v6  ;;  %v1620_v29 = vsub.f32 %v345_v16, %v1331_v0  ;;  %s1702_s9 = sld [smem:[#allocation2 + $0x45]] }
  0x5f   :  { %v331_v50 = vadd.f32 %v329_v61, %v291_v45  ;;  %v332_v33 = vadd.f32 %v330_v8, %v292_v37  ;;  %v337_v30 = vadd.f32 %v335_v10, %v297_v51  ;;  %v338_v32 = vadd.f32 %v336_v24, %v298_v35  ;;  %s1704_s10 = sld [smem:[#allocation2 + $0x46]] }
  0x60   :  { %v343_v40 = vadd.f32 %v341_v26, %v303_v38  ;;  %v344_v39 = vadd.f32 %v342_v58, %v304_v41  ;;  %v1623_v46 = vsub.f32 %v346_v25, %v1336_v1  ;;  %v349_v48 = vmul.f32 %v1341_v2, %v1620_v29  ;;  %s1709_s11 = sld [smem:[#allocation2 + $0x47]] }
  0x61   :  { %v352_v4 = vstv %s1591_s14  ;;  %v358_v0 = vstv %s1598_s15  ;;  %v364_v34 = vstv %s1600_s16  ;;  %v369_v45 = vmul.f32 %v1380_v14, %v1620_v29  ;;  %s1711_s12 = sld [smem:[#allocation2 + $0x48]] }
  0x62   :  { %v350_v37 = vmul.f32 %v1346_v3, %v1623_v46  ;;  %v353_v51 = vmul.f32 %v352_v4, %v349_v48  ;;  %v359_v1 = vmul.f32 %v358_v0, %v349_v48  ;;  %v365_v35 = vmul.f32 %v364_v34, %v349_v48  ;;  %s1718_s13 = sld [smem:[#allocation2 + $0x49]] }
  0x63   :  { %v370_v52 = vmul.f32 %v1384_v15, %v1623_v46  ;;  %v372_v7 = vstv %s1602_s17  ;;  %v378_v38 = vstv %s1608_s18  ;;  %v384_v41 = vstv %s1610_s19  ;;  %s1744_s14 = sld [smem:[#allocation2 + $0x4a]] }
  0x64   :  { %v354_v42 = vmul.f32 %v352_v4, %v350_v37  ;;  %v355_v44 = vadd.f32 %v353_v51, %v311_v62  ;;  %v360_v55 = vmul.f32 %v358_v0, %v350_v37  ;;  %v361_v53 = vadd.f32 %v359_v1, %v317_v20  ;;  %s1752_s15 = sld [smem:[#allocation2 + $0x4b]] }
  0x65   :  { %v366_v56 = vmul.f32 %v364_v34, %v350_v37  ;;  %v367_v57 = vadd.f32 %v365_v35, %v323_v21  ;;  %v373_v11 = vmul.f32 %v372_v7, %v369_v45  ;;  %v374_v19 = vmul.f32 %v372_v7, %v370_v52  ;;  %s1754_s16 = sld [smem:[#allocation2 + $0x4c]] }
  0x66   :  { %v356_v60 = vadd.f32 %v354_v42, %v312_v54  ;;  %v362_v22 = vadd.f32 %v360_v55, %v318_v12  ;;  %v379_v9 = vmul.f32 %v378_v38, %v369_v45  ;;  %v380_v16 = vmul.f32 %v378_v38, %v370_v52  ;;  %s1756_s17 = sld [smem:[#allocation2 + $0x4d]] }
  0x67   :  { %v368_v61 = vadd.f32 %v366_v56, %v324_v13  ;;  %v375_v62 = vadd.f32 %v373_v11, %v331_v50  ;;  %v376_v20 = vadd.f32 %v374_v19, %v332_v33  ;;  %v385_v8 = vmul.f32 %v384_v41, %v369_v45  ;;  %s1758_s18 = sld [smem:[#allocation2 + $0x4e]] }
  0x68   :  { %v381_v10 = vadd.f32 %v379_v9, %v337_v30  ;;  %v382_v24 = vadd.f32 %v380_v16, %v338_v32  ;;  %v386_v21 = vmul.f32 %v384_v41, %v370_v52  ;;  %v389_v26 = vmul.f32 %v1620_v29, %v1401_v27  ;;  %s1760_s19 = sld [smem:[#allocation2 + $0x4f]] }
  0x69   :  { %v387_v54 = vadd.f32 %v385_v8, %v343_v40  ;;  %v390_v12 = vmul.f32 %v1623_v46, %v1406_v31  ;;  %v392_v58 = vstv %s1627_s20  ;;  %v398_v25 = vstv %s1634_s1  ;;  %s1762_s20 = sld [smem:[#allocation2 + $0x50]] }
  0x6a   :  { %v388_v48 = vadd.f32 %v386_v21, %v344_v39  ;;  %v393_v13 = vmul.f32 %v392_v58, %v389_v26  ;;  %v399_v4 = vmul.f32 %v398_v25, %v389_v26  ;;  %v404_v50 = vstv %s1638_s2  ;;  %s1770_s1 = sld [smem:[#allocation2 + $0x51]] }
  0x6b   :  { %v394_v33 = vmul.f32 %v392_v58, %v390_v12  ;;  %v400_v30 = vmul.f32 %v398_v25, %v390_v12  ;;  %v405_v32 = vmul.f32 %v404_v50, %v389_v26  ;;  %v406_v0 = vmul.f32 %v404_v50, %v390_v12  ;;  %s1774_s2 = sld [smem:[#allocation2 + $0x52]] }
  0x6c   :  { %v395_v40 = vadd.f32 %v393_v13, %v355_v44  ;;  %v401_v34 = vadd.f32 %v399_v4, %v361_v53  ;;  %v409_v45 = vmul.f32 %v1620_v29, %v1424_v43  ;;  %v410_v39 = vmul.f32 %v1623_v46, %v1431_v47 }
  0x6d   :  { %v396_v37 = vadd.f32 %v394_v33, %v356_v60  ;;  %v402_v51 = vadd.f32 %v400_v30, %v362_v22  ;;  %v407_v1 = vadd.f32 %v405_v32, %v367_v57  ;;  %v408_v35 = vadd.f32 %v406_v0, %v368_v61 }
  0x6e   :  { %v412_v52 = vstv %s1645_s21  ;;  %v418_v7 = vstv %s1647_s22  ;;  %v424_v38 = vstv %s1649_s23  ;;  %v429_v41 = vmul.f32 %v1620_v29, %v1443_v59  ;;  %s1776_s21 = sld [smem:[#allocation2 + $0x53]] }
  0x6f   :  { %v413_v42 = vmul.f32 %v412_v52, %v409_v45  ;;  %v414_v44 = vmul.f32 %v412_v52, %v410_v39  ;;  %v419_v55 = vmul.f32 %v418_v7, %v409_v45  ;;  %v420_v53 = vmul.f32 %v418_v7, %v410_v39  ;;  %s1778_s22 = sld [smem:[#allocation2 + $0x54]] }
  0x70   :  { %v425_v56 = vmul.f32 %v424_v38, %v409_v45  ;;  %v426_v11 = vmul.f32 %v424_v38, %v410_v39  ;;  %v430_v57 = vmul.f32 %v1623_v46, %v1448_v63  ;;  %v432_v19 = vstv %s1653_s24  ;;  %s1780_s23 = sld [smem:[#allocation2 + $0x55]] }
  0x71   :  { %v415_v60 = vadd.f32 %v413_v42, %v375_v62  ;;  %v416_v22 = vadd.f32 %v414_v44, %v376_v20  ;;  %v421_v9 = vadd.f32 %v419_v55, %v381_v10  ;;  %v422_v16 = vadd.f32 %v420_v53, %v382_v24  ;;  %s1786_s24 = sld [smem:[#allocation2 + $0x56]] }
  0x72   :  { %v427_v61 = vadd.f32 %v425_v56, %v387_v54  ;;  %v428_v8 = vadd.f32 %v426_v11, %v388_v48  ;;  %v433_v21 = vmul.f32 %v432_v19, %v429_v41  ;;  %v434_v26 = vmul.f32 %v432_v19, %v430_v57 }
  0x73   :  { %v438_v12 = vstv %s1660_s25  ;;  %v444_v58 = vstv %s1662_s26  ;;  %v449_v25 = vmul.f32 %v1620_v29, %v1468_v23  ;;  %v450_v62 = vmul.f32 %v1623_v46, %v1473_v28  ;;  %s1793_s25 = sld [smem:[#allocation2 + $0x57]] }
  0x74   :  { %v435_v20 = vadd.f32 %v433_v21, %v395_v40  ;;  %v436_v10 = vadd.f32 %v434_v26, %v396_v37  ;;  %v439_v24 = vmul.f32 %v438_v12, %v429_v41  ;;  %v440_v54 = vmul.f32 %v438_v12, %v430_v57  ;;  %s1795_s26 = sld [smem:[#allocation2 + $0x58]] }
  0x75   :  { %v445_v48 = vmul.f32 %v444_v58, %v429_v41  ;;  %v446_v13 = vmul.f32 %v444_v58, %v430_v57  ;;  %v452_v4 = vstv %s1668_s27  ;;  %v458_v50 = vstv %s1670_s28  ;;  %s1800_s27 = sld [smem:[#allocation2 + $0x59]] }
  0x76   :  { %v441_v33 = vadd.f32 %v439_v24, %v401_v34  ;;  %v442_v30 = vadd.f32 %v440_v54, %v402_v51  ;;  %v453_v32 = vmul.f32 %v452_v4, %v449_v25  ;;  %v454_v0 = vmul.f32 %v452_v4, %v450_v62  ;;  %s1802_s28 = sld [smem:[#allocation2 + $0x5a]] }
  0x77   :  { %v447_v45 = vadd.f32 %v445_v48, %v407_v1  ;;  %v448_v40 = vadd.f32 %v446_v13, %v408_v35  ;;  %v459_v39 = vmul.f32 %v458_v50, %v449_v25  ;;  %v460_v37 = vmul.f32 %v458_v50, %v450_v62 }
  0x78   :  { %v455_v52 = vadd.f32 %v453_v32, %v415_v60  ;;  %v456_v7 = vadd.f32 %v454_v0, %v416_v22  ;;  %v464_v38 = vstv %s1677_s29  ;;  %v469_v34 = vmul.f32 %v1620_v29, %v1484_v49  ;;  %s1804_s29 = sld [smem:[#allocation2 + $0x5b]] }
  0x79   :  { %v461_v51 = vadd.f32 %v459_v39, %v421_v9  ;;  %v462_v41 = vadd.f32 %v460_v37, %v422_v16  ;;  %v465_v42 = vmul.f32 %v464_v38, %v449_v25  ;;  %v466_v1 = vmul.f32 %v464_v38, %v450_v62 }
  0x7a   :  { %v470_v35 = vmul.f32 %v1623_v46, %v1491_v36  ;;  %v472_v44 = vstv %s1682_s30  ;;  %v478_v55 = vstv %s1684_s4  ;;  %v484_v53 = vstv %s1686_s5  ;;  %s1812_s30 = sld [smem:[#allocation2 + $0x5c]] }
  0x7b   :  { %v467_v56 = vadd.f32 %v465_v42, %v427_v61  ;;  %v468_v11 = vadd.f32 %v466_v1, %v428_v8  ;;  %v473_v57 = vmul.f32 %v472_v44, %v469_v34  ;;  %v479_v19 = vmul.f32 %v478_v55, %v469_v34  ;;  %s1816_s4 = sld [smem:[#allocation2 + $0x5d]] }
  0x7c   :  { %v474_v60 = vmul.f32 %v472_v44, %v470_v35  ;;  %v480_v22 = vmul.f32 %v478_v55, %v470_v35  ;;  %v485_v9 = vmul.f32 %v484_v53, %v469_v34  ;;  %v486_v16 = vmul.f32 %v484_v53, %v470_v35  ;;  %s1820_s5 = sld [smem:[#allocation2 + $0x5e]] }
  0x7d   :  { %v475_v21 = vadd.f32 %v473_v57, %v435_v20  ;;  %v481_v26 = vadd.f32 %v479_v19, %v441_v33  ;;  %v489_v12 = vmul.f32 %v1620_v29, %v1354_v5  ;;  %v490_v61 = vmul.f32 %v1623_v46, %v1358_v6 }
  0x7e   :  { %v476_v8 = vadd.f32 %v474_v60, %v436_v10  ;;  %v482_v58 = vadd.f32 %v480_v22, %v442_v30  ;;  %v487_v25 = vadd.f32 %v485_v9, %v447_v45  ;;  %v488_v62 = vadd.f32 %v486_v16, %v448_v40 }
  0x7f   :  { %v1725_v24 = vsub.f32 %v489_v12, %v1388_v17  ;;  %v1728_v54 = vsub.f32 %v490_v61, %v1390_v18  ;;  %v496_v20 = vstv %s1694_s6  ;;  %v502_v48 = vstv %s1696_s7  ;;  %s1978_s6 = sld [smem:[#allocation2 + $0x79]] }
  0x80   :  { %v508_v13 = vstv %s1700_s8  ;;  %v516_v4 = vstv %s1702_s9  ;;  %v522_v50 = vstv %s1704_s10  ;;  %v528_v33 = vstv %s1709_s11  ;;  %s1852_s8 = sld [smem:[#allocation2 + $0x5f]] }
  0x81   :  { %v493_v10 = vmul.f32 %v1341_v2, %v1725_v24  ;;  %v494_v30 = vmul.f32 %v1346_v3, %v1728_v54  ;;  %v513_v17 = vmul.f32 %v1380_v14, %v1725_v24  ;;  %v514_v32 = vmul.f32 %v1384_v15, %v1728_v54  ;;  %s1861_s11 = sld [smem:[#allocation2 + $0x60]] }
  0x82   :  { %v533_v18 = vmul.f32 %v1725_v24, %v1401_v27  ;;  %v534_v0 = vmul.f32 %v1728_v54, %v1406_v31  ;;  %v536_v45 = vstv %s1711_s12  ;;  %v542_v40 = vstv %s1718_s13  ;;  %s1865_s12 = sld [smem:[#allocation2 + $0x61]] }
  0x83   :  { %v497_v2 = vmul.f32 %v496_v20, %v493_v10  ;;  %v498_v3 = vmul.f32 %v496_v20, %v494_v30  ;;  %v503_v39 = vmul.f32 %v502_v48, %v493_v10  ;;  %v504_v37 = vmul.f32 %v502_v48, %v494_v30  ;;  %s1870_s13 = sld [smem:[#allocation2 + $0x63]] }
  0x84   :  { %v509_v38 = vmul.f32 %v508_v13, %v493_v10  ;;  %v510_v34 = vmul.f32 %v508_v13, %v494_v30  ;;  %v517_v42 = vmul.f32 %v516_v4, %v513_v17  ;;  %v518_v1 = vmul.f32 %v516_v4, %v514_v32  ;;  %s1980_s7 = sld [smem:[#allocation2 + $0x7a]] }
  0x85   :  { %v499_v35 = vadd.f32 %v497_v2, %v455_v52  ;;  %v500_v44 = vadd.f32 %v498_v3, %v456_v7  ;;  %v505_v55 = vadd.f32 %v503_v39, %v461_v51  ;;  %v506_v53 = vadd.f32 %v504_v37, %v462_v41  ;;  %s1987_s9 = sld [smem:[#allocation2 + $0x7c]] }
  0x86   :  { %v511_v57 = vadd.f32 %v509_v38, %v467_v56  ;;  %v512_v19 = vadd.f32 %v510_v34, %v468_v11  ;;  %v519_v60 = vadd.f32 %v517_v42, %v475_v21  ;;  %v520_v22 = vadd.f32 %v518_v1, %v476_v8  ;;  %s1989_s10 = sld [smem:[#allocation2 + $0x7d]] }
  0x87   :  { %v523_v9 = vmul.f32 %v522_v50, %v513_v17  ;;  %v524_v16 = vmul.f32 %v522_v50, %v514_v32  ;;  %v529_v12 = vmul.f32 %v528_v33, %v513_v17  ;;  %v530_v61 = vmul.f32 %v528_v33, %v514_v32 }
  0x88   :  { %v537_v20 = vmul.f32 %v536_v45, %v533_v18  ;;  %v538_v48 = vmul.f32 %v536_v45, %v534_v0  ;;  %v543_v13 = vmul.f32 %v542_v40, %v533_v18  ;;  %v544_v4 = vmul.f32 %v542_v40, %v534_v0 }
  0x89   :  { %v525_v52 = vadd.f32 %v523_v9, %v481_v26  ;;  %v526_v7 = vadd.f32 %v524_v16, %v482_v58  ;;  %v531_v51 = vadd.f32 %v529_v12, %v487_v25  ;;  %v532_v41 = vadd.f32 %v530_v61, %v488_v62 }
  0x8a   :  { %v539_v56 = vadd.f32 %v537_v20, %v499_v35  ;;  %v540_v11 = vadd.f32 %v538_v48, %v500_v44  ;;  %v545_v21 = vadd.f32 %v543_v13, %v505_v55  ;;  %v546_v8 = vadd.f32 %v544_v4, %v506_v53 }
  0x8b   :  { %v548_v50 = vstv %s1744_s14  ;;  %v553_v33 = vmul.f32 %v1725_v24, %v1424_v43  ;;  %v554_v10 = vmul.f32 %v1728_v54, %v1431_v47  ;;  %v556_v30 = vstv %s1752_s15  ;;  %s1872_s14 = sld [smem:[#allocation2 + $0x64]] }
  0x8c   :  { %v549_v26 = vmul.f32 %v548_v50, %v533_v18  ;;  %v550_v58 = vmul.f32 %v548_v50, %v534_v0  ;;  %v562_v25 = vstv %s1754_s16  ;;  %v568_v62 = vstv %s1756_s17  ;;  %s1876_s15 = sld [smem:[#allocation2 + $0x65]] }
  0x8d   :  { %v557_v17 = vmul.f32 %v556_v30, %v553_v33  ;;  %v558_v32 = vmul.f32 %v556_v30, %v554_v10  ;;  %v563_v45 = vmul.f32 %v562_v25, %v553_v33  ;;  %v564_v40 = vmul.f32 %v562_v25, %v554_v10  ;;  %s1885_s16 = sld [smem:[#allocation2 + $0x66]] }
  0x8e   :  { %v551_v2 = vadd.f32 %v549_v26, %v511_v57  ;;  %v552_v3 = vadd.f32 %v550_v58, %v512_v19  ;;  %v569_v39 = vmul.f32 %v568_v62, %v553_v33  ;;  %v570_v37 = vmul.f32 %v568_v62, %v554_v10  ;;  %s1887_s17 = sld [smem:[#allocation2 + $0x67]] }
  0x8f   :  { %v559_v18 = vadd.f32 %v557_v17, %v519_v60  ;;  %v560_v0 = vadd.f32 %v558_v32, %v520_v22  ;;  %v565_v38 = vadd.f32 %v563_v45, %v525_v52  ;;  %v566_v34 = vadd.f32 %v564_v40, %v526_v7 }
  0x90   :  { %v571_v42 = vadd.f32 %v569_v39, %v531_v51  ;;  %v572_v1 = vadd.f32 %v570_v37, %v532_v41  ;;  %v573_v35 = vmul.f32 %v1725_v24, %v1443_v59  ;;  %v574_v44 = vmul.f32 %v1728_v54, %v1448_v63 }
  0x91   :  { %v576_v55 = vstv %s1758_s18  ;;  %v582_v53 = vstv %s1760_s19  ;;  %v588_v57 = vstv %s1762_s20  ;;  %v593_v19 = vmul.f32 %v1725_v24, %v1468_v23  ;;  %s1889_s18 = sld [smem:[#allocation2 + $0x68]] }
  0x92   :  { %v577_v60 = vmul.f32 %v576_v55, %v573_v35  ;;  %v578_v22 = vmul.f32 %v576_v55, %v574_v44  ;;  %v583_v9 = vmul.f32 %v582_v53, %v573_v35  ;;  %v584_v16 = vmul.f32 %v582_v53, %v574_v44  ;;  %s1894_s19 = sld [smem:[#allocation2 + $0x69]] }
  0x93   :  { %v589_v12 = vmul.f32 %v588_v57, %v573_v35  ;;  %v590_v61 = vmul.f32 %v588_v57, %v574_v44  ;;  %v594_v20 = vmul.f32 %v1728_v54, %v1473_v28  ;;  %v596_v48 = vstv %s1770_s1  ;;  %s1901_s20 = sld [smem:[#allocation2 + $0x6a]] }
  0x94   :  { %v579_v13 = vadd.f32 %v577_v60, %v539_v56  ;;  %v580_v4 = vadd.f32 %v578_v22, %v540_v11  ;;  %v585_v52 = vadd.f32 %v583_v9, %v545_v21  ;;  %v586_v7 = vadd.f32 %v584_v16, %v546_v8  ;;  %s1903_s1 = sld [smem:[#allocation2 + $0x6b]] }
  0x95   :  { %v591_v51 = vadd.f32 %v589_v12, %v551_v2  ;;  %v592_v41 = vadd.f32 %v590_v61, %v552_v3  ;;  %v597_v50 = vmul.f32 %v596_v48, %v593_v19  ;;  %v598_v33 = vmul.f32 %v596_v48, %v594_v20  ;;  %v1840_v48 = vld [vmem:[%s2157_s0 + $0x10] sm:$0xff] }
  0x96   :  { %v602_v10 = vstv %s1774_s2  ;;  %v608_v30 = vstv %s1776_s21  ;;  %v613_v26 = vmul.f32 %v1725_v24, %v1484_v49  ;;  %v614_v56 = vmul.f32 %v1728_v54, %v1491_v36  ;;  %s1909_s2 = sld [smem:[#allocation2 + $0x6c]] }
  0x97   :  { %v599_v11 = vadd.f32 %v597_v50, %v559_v18  ;;  %v1814_v21 = vadd.f32 %v598_v33, %v560_v0  ;;  %v603_v8 = vmul.f32 %v602_v10, %v593_v19  ;;  %v604_v58 = vmul.f32 %v602_v10, %v594_v20  ;;  %s1916_s21 = sld [smem:[#allocation2 + $0x6d]] }
  0x98   :  { %v609_v25 = vmul.f32 %v608_v30, %v593_v19  ;;  %v610_v62 = vmul.f32 %v608_v30, %v594_v20  ;;  %v616_v17 = vstv %s1778_s22  ;;  %v622_v32 = vstv %s1780_s23  ;;  %s1918_s22 = sld [smem:[#allocation2 + $0x6e]] }
  0x99   :  { %v605_v45 = vadd.f32 %v603_v8, %v565_v38  ;;  %v606_v40 = vadd.f32 %v604_v58, %v566_v34  ;;  %v617_v2 = vmul.f32 %v616_v17, %v613_v26  ;;  %v618_v3 = vmul.f32 %v616_v17, %v614_v56  ;;  %s1923_s23 = sld [smem:[#allocation2 + $0x6f]] }
  0x9a   :  { %v611_v39 = vadd.f32 %v609_v25, %v571_v42  ;;  %v612_v37 = vadd.f32 %v610_v62, %v572_v1  ;;  %v623_v18 = vmul.f32 %v622_v32, %v613_v26  ;;  %v624_v0 = vmul.f32 %v622_v32, %v614_v56 }
  0x9b   :  { %v619_v35 = vadd.f32 %v617_v2, %v579_v13  ;;  %v620_v44 = vadd.f32 %v618_v3, %v580_v4  ;;  %v628_v55 = vstv %s1786_s24  ;;  %v633_v53 = vmul.f32 %v1725_v24, %v1354_v5  ;;  %s1931_s24 = sld [smem:[#allocation2 + $0x70]] }
  0x9c   :  { %v625_v57 = vadd.f32 %v623_v18, %v585_v52  ;;  %v626_v38 = vadd.f32 %v624_v0, %v586_v7  ;;  %v629_v34 = vmul.f32 %v628_v55, %v613_v26  ;;  %v630_v19 = vmul.f32 %v628_v55, %v614_v56 }
  0x9d   :  { %v634_v42 = vmul.f32 %v1728_v54, %v1358_v6  ;;  %v1828_v1 = vsub.f32 %v633_v53, %v1620_v29  ;;  %v640_v60 = vstv %s1793_s25  ;;  %v646_v22 = vstv %s1795_s26  ;;  %s1933_s25 = sld [smem:[#allocation2 + $0x71]] }
  0x9e   :  { %v631_v9 = vadd.f32 %v629_v34, %v591_v51  ;;  %v632_v16 = vadd.f32 %v630_v19, %v592_v41  ;;  %v652_v12 = vstv %s1800_s27  ;;  %v660_v61 = vstv %s1802_s28  ;;  %s1941_s26 = sld [smem:[#allocation2 + $0x72]] }
  0x9f   :  { %v1835_v20 = vsub.f32 %v634_v42, %v1623_v46  ;;  %v637_v13 = vmul.f32 %v1840_v48, %v1828_v1  ;;  %v657_v29 = vmul.f32 %v1380_v14, %v1828_v1  ;;  %v666_v4 = vstv %s1804_s29  ;;  %v1857_v46 = vld [vmem:[%s2157_s0 + $0x18] sm:$0xff]  ;;  %s1867_s0 = sld [smem:[#allocation2 + $0x62]] }
  0xa0   :  { %v672_v52 = vstv %s1812_s30  ;;  %v677_v7 = vmul.f32 %v1828_v1, %v1401_v27  ;;  %v680_v51 = vstv %s1816_s4  ;;  %v686_v41 = vstv %s1820_s5  ;;  %s1945_s27 = sld [smem:[#allocation2 + $0x73]] }
  0xa1   :  { %v638_v50 = vmul.f32 %v1857_v46, %v1835_v20  ;;  %v641_v33 = vmul.f32 %v640_v60, %v637_v13  ;;  %v647_v10 = vmul.f32 %v646_v22, %v637_v13  ;;  %v653_v30 = vmul.f32 %v652_v12, %v637_v13  ;;  %s1951_s28 = sld [smem:[#allocation2 + $0x74]] }
  0xa2   :  { %v658_v26 = vmul.f32 %v1384_v15, %v1835_v20  ;;  %v661_v56 = vmul.f32 %v660_v61, %v657_v29  ;;  %v667_v8 = vmul.f32 %v666_v4, %v657_v29  ;;  %v673_v58 = vmul.f32 %v672_v52, %v657_v29  ;;  %s1959_s29 = sld [smem:[#allocation2 + $0x75]] }
  0xa3   :  { %v642_v25 = vmul.f32 %v640_v60, %v638_v50  ;;  %v643_v62 = vadd.f32 %v641_v33, %v599_v11  ;;  %v648_v17 = vmul.f32 %v646_v22, %v638_v50  ;;  %v649_v32 = vadd.f32 %v647_v10, %v605_v45  ;;  %s1961_s30 = sld [smem:[#allocation2 + $0x76]] }
  0xa4   :  { %v654_v2 = vmul.f32 %v652_v12, %v638_v50  ;;  %v655_v3 = vadd.f32 %v653_v30, %v611_v39  ;;  %v662_v18 = vmul.f32 %v660_v61, %v658_v26  ;;  %v663_v0 = vadd.f32 %v661_v56, %v619_v35  ;;  %s1969_s4 = sld [smem:[#allocation2 + $0x77]] }
  0xa5   :  { %v644_v55 = vadd.f32 %v642_v25, %v1814_v21  ;;  %v650_v53 = vadd.f32 %v648_v17, %v606_v40  ;;  %v668_v34 = vmul.f32 %v666_v4, %v658_v26  ;;  %v669_v19 = vadd.f32 %v667_v8, %v625_v57  ;;  %s1971_s5 = sld [smem:[#allocation2 + $0x78]] }
  0xa6   :  { %v656_v42 = vadd.f32 %v654_v2, %v612_v37  ;;  %v664_v13 = vadd.f32 %v662_v18, %v620_v44  ;;  %v674_v60 = vmul.f32 %v672_v52, %v658_v26  ;;  %v675_v11 = vadd.f32 %v673_v58, %v631_v9 }
  0xa7   :  { %v670_v45 = vadd.f32 %v668_v34, %v626_v38  ;;  %v678_v39 = vmul.f32 %v1835_v20, %v1406_v31  ;;  %v681_v35 = vmul.f32 %v680_v51, %v677_v7  ;;  %v687_v21 = vmul.f32 %v686_v41, %v677_v7 }
  0xa8   :  { %v676_v40 = vadd.f32 %v674_v60, %v632_v16  ;;  %v692_v57 = vstv %s1852_s8  ;;  %v697_v37 = vmul.f32 %v1828_v1, %v1424_v43  ;;  %v698_v44 = vmul.f32 %v1835_v20, %v1431_v47  ;;  %s1985_s8 = sld [smem:[#allocation2 + $0x7b]] }
  0xa9   :  { %v682_v22 = vmul.f32 %v680_v51, %v678_v39  ;;  %v683_v9 = vadd.f32 %v681_v35, %v643_v62  ;;  %v688_v12 = vmul.f32 %v686_v41, %v678_v39  ;;  %v689_v38 = vadd.f32 %v687_v21, %v649_v32 }
  0xaa   :  { %v693_v61 = vmul.f32 %v692_v57, %v677_v7  ;;  %v694_v29 = vmul.f32 %v692_v57, %v678_v39  ;;  %v700_v4 = vstv %s1861_s11  ;;  %v706_v52 = vstv %s1865_s12  ;;  %s1999_s11 = sld [smem:[#allocation2 + $0x7e]] }
  0xab   :  { %v684_v50 = vadd.f32 %v682_v22, %v644_v55  ;;  %v690_v16 = vadd.f32 %v688_v12, %v650_v53  ;;  %v701_v33 = vmul.f32 %v700_v4, %v697_v37  ;;  %v702_v10 = vmul.f32 %v700_v4, %v698_v44  ;;  %s2001_s12 = sld [smem:[#allocation2 + $0x7f]] }
  0xac   :  { %v695_v30 = vadd.f32 %v693_v61, %v655_v3  ;;  %v696_v51 = vadd.f32 %v694_v29, %v656_v42  ;;  %v707_v41 = vmul.f32 %v706_v52, %v697_v37  ;;  %v708_v26 = vmul.f32 %v706_v52, %v698_v44 }
  0xad   :  { %v703_v7 = vadd.f32 %v701_v33, %v663_v0  ;;  %v704_v56 = vadd.f32 %v702_v10, %v664_v13  ;;  %v712_v8 = vstv %s1867_s0  ;;  %v717_v58 = vmul.f32 %v1828_v1, %v1443_v59  ;;  %s2003_s0 = sld [smem:[#allocation2 + $0x80]] }
  0xae   :  { %v709_v25 = vadd.f32 %v707_v41, %v669_v19  ;;  %v710_v62 = vadd.f32 %v708_v26, %v670_v45  ;;  %v713_v17 = vmul.f32 %v712_v8, %v697_v37  ;;  %v714_v32 = vmul.f32 %v712_v8, %v698_v44 }
  0xaf   :  { %v718_v2 = vmul.f32 %v1835_v20, %v1448_v63  ;;  %v720_v3 = vstv %s1870_s13  ;;  %v726_v18 = vstv %s1872_s14  ;;  %v732_v55 = vstv %s1876_s15  ;;  %s2008_s13 = sld [smem:[#allocation2 + $0x81]] }
  0xb0   :  { %v715_v53 = vadd.f32 %v713_v17, %v675_v11  ;;  %v716_v34 = vadd.f32 %v714_v32, %v676_v40  ;;  %v721_v0 = vmul.f32 %v720_v3, %v717_v58  ;;  %v727_v42 = vmul.f32 %v726_v18, %v717_v58  ;;  %s2015_s14 = sld [smem:[#allocation2 + $0x82]] }
  0xb1   :  { %v722_v19 = vmul.f32 %v720_v3, %v718_v2  ;;  %v728_v13 = vmul.f32 %v726_v18, %v718_v2  ;;  %v733_v60 = vmul.f32 %v732_v55, %v717_v58  ;;  %v734_v45 = vmul.f32 %v732_v55, %v718_v2  ;;  %s2017_s15 = sld [smem:[#allocation2 + $0x83]] }
  0xb2   :  { %v723_v39 = vadd.f32 %v721_v0, %v683_v9  ;;  %v729_v35 = vadd.f32 %v727_v42, %v689_v38  ;;  %v737_v21 = vmul.f32 %v1828_v1, %v1468_v23  ;;  %v738_v11 = vmul.f32 %v1835_v20, %v1473_v28 }
  0xb3   :  { %v724_v40 = vadd.f32 %v722_v19, %v684_v50  ;;  %v730_v57 = vadd.f32 %v728_v13, %v690_v16  ;;  %v735_v37 = vadd.f32 %v733_v60, %v695_v30  ;;  %v736_v44 = vadd.f32 %v734_v45, %v696_v51 }
  0xb4   :  { %v740_v22 = vstv %s1885_s16  ;;  %v746_v12 = vstv %s1887_s17  ;;  %v752_v61 = vstv %s1889_s18  ;;  %v757_v9 = vmul.f32 %v1828_v1, %v1484_v49  ;;  %s2019_s16 = sld [smem:[#allocation2 + $0x84]] }
  0xb5   :  { %v741_v38 = vmul.f32 %v740_v22, %v737_v21  ;;  %v742_v29 = vmul.f32 %v740_v22, %v738_v11  ;;  %v747_v4 = vmul.f32 %v746_v12, %v737_v21  ;;  %v748_v52 = vmul.f32 %v746_v12, %v738_v11  ;;  %s2025_s17 = sld [smem:[#allocation2 + $0x85]] }
  0xb6   :  { %v753_v50 = vmul.f32 %v752_v61, %v737_v21  ;;  %v754_v16 = vmul.f32 %v752_v61, %v738_v11  ;;  %v758_v33 = vmul.f32 %v1835_v20, %v1491_v36  ;;  %v760_v10 = vstv %s1894_s19  ;;  %s2027_s18 = sld [smem:[#allocation2 + $0x86]] }
  0xb7   :  { %v743_v30 = vadd.f32 %v741_v38, %v703_v7  ;;  %v744_v51 = vadd.f32 %v742_v29, %v704_v56  ;;  %v749_v41 = vadd.f32 %v747_v4, %v709_v25  ;;  %v750_v26 = vadd.f32 %v748_v52, %v710_v62  ;;  %s2039_s19 = sld [smem:[#allocation2 + $0x87]] }
  0xb8   :  { %v755_v8 = vadd.f32 %v753_v50, %v715_v53  ;;  %v756_v58 = vadd.f32 %v754_v16, %v716_v34  ;;  %v761_v17 = vmul.f32 %v760_v10, %v757_v9  ;;  %v762_v32 = vmul.f32 %v760_v10, %v758_v33 }
  0xb9   :  { %v766_v2 = vstv %s1901_s20  ;;  %v772_v3 = vstv %s1903_s1  ;;  %v777_v18 = vmul.f32 %v1828_v1, %v1354_v5  ;;  %v778_v55 = vmul.f32 %v1835_v20, %v1358_v6  ;;  %s2046_s20 = sld [smem:[#allocation2 + $0x88]] }
  0xba   :  { %v763_v7 = vadd.f32 %v761_v17, %v723_v39  ;;  %v764_v56 = vadd.f32 %v762_v32, %v724_v40  ;;  %v767_v25 = vmul.f32 %v766_v2, %v757_v9  ;;  %v768_v62 = vmul.f32 %v766_v2, %v758_v33  ;;  %s2053_s1 = sld [smem:[#allocation2 + $0x89]] }
  0xbb   :  { %v773_v53 = vmul.f32 %v772_v3, %v757_v9  ;;  %v774_v34 = vmul.f32 %v772_v3, %v758_v33  ;;  %v1936_v0 = vsub.f32 %v777_v18, %v1725_v24  ;;  %v1939_v42 = vsub.f32 %v778_v55, %v1728_v54 }
  0xbc   :  { %v769_v19 = vadd.f32 %v767_v25, %v729_v35  ;;  %v770_v13 = vadd.f32 %v768_v62, %v730_v57  ;;  %v784_v60 = vstv %s1909_s2  ;;  %v790_v45 = vstv %s1916_s21  ;;  %s2057_s2 = sld [smem:[#allocation2 + $0x8a]] }
  0xbd   :  { %v775_v39 = vadd.f32 %v773_v53, %v735_v37  ;;  %v776_v21 = vadd.f32 %v774_v34, %v736_v44  ;;  %v781_v11 = vmul.f32 %v1840_v48, %v1936_v0  ;;  %v782_v24 = vmul.f32 %v1857_v46, %v1939_v42  ;;  %s2064_s21 = sld [smem:[#allocation2 + $0x8b]] }
  0xbe   :  { %v796_v54 = vstv %s1918_s22  ;;  %v801_v40 = vmul.f32 %v1380_v14, %v1936_v0  ;;  %v802_v35 = vmul.f32 %v1384_v15, %v1939_v42  ;;  %v804_v57 = vstv %s1923_s23  ;;  %s2066_s22 = sld [smem:[#allocation2 + $0x8c]] }
  0xbf   :  { %v785_v22 = vmul.f32 %v784_v60, %v781_v11  ;;  %v786_v12 = vmul.f32 %v784_v60, %v782_v24  ;;  %v791_v37 = vmul.f32 %v790_v45, %v781_v11  ;;  %v792_v44 = vmul.f32 %v790_v45, %v782_v24  ;;  %s2068_s23 = sld [smem:[#allocation2 + $0x8d]] }
  0xc0   :  { %v797_v61 = vmul.f32 %v796_v54, %v781_v11  ;;  %v798_v9 = vmul.f32 %v796_v54, %v782_v24  ;;  %v805_v38 = vmul.f32 %v804_v57, %v801_v40  ;;  %v806_v29 = vmul.f32 %v804_v57, %v802_v35 }
  0xc1   :  { %v787_v4 = vadd.f32 %v785_v22, %v743_v30  ;;  %v788_v52 = vadd.f32 %v786_v12, %v744_v51  ;;  %v793_v50 = vadd.f32 %v791_v37, %v749_v41  ;;  %v794_v16 = vadd.f32 %v792_v44, %v750_v26 }
  0xc2   :  { %v799_v33 = vadd.f32 %v797_v61, %v755_v8  ;;  %v800_v10 = vadd.f32 %v798_v9, %v756_v58  ;;  %v807_v17 = vadd.f32 %v805_v38, %v763_v7  ;;  %v808_v32 = vadd.f32 %v806_v29, %v764_v56 }
  0xc3   :  { %v810_v2 = vstv %s1931_s24  ;;  %v816_v3 = vstv %s1933_s25  ;;  %v821_v18 = vmul.f32 %v1936_v0, %v1401_v27  ;;  %v822_v30 = vmul.f32 %v1939_v42, %v1406_v31  ;;  %s2070_s24 = sld [smem:[#allocation2 + $0x8e]] }
  0xc4   :  { %v811_v51 = vmul.f32 %v810_v2, %v801_v40  ;;  %v812_v41 = vmul.f32 %v810_v2, %v802_v35  ;;  %v817_v26 = vmul.f32 %v816_v3, %v801_v40  ;;  %v818_v8 = vmul.f32 %v816_v3, %v802_v35  ;;  %s2072_s25 = sld [smem:[#allocation2 + $0x8f]] }
  0xc5   :  { %v824_v58 = vstv %s1941_s26  ;;  %v830_v55 = vstv %s1945_s27  ;;  %v836_v7 = vstv %s1951_s28  ;;  %v841_v56 = vmul.f32 %v1936_v0, %v1424_v43  ;;  %s2076_s26 = sld [smem:[#allocation2 + $0x90]] }
  0xc6   :  { %v813_v25 = vadd.f32 %v811_v51, %v769_v19  ;;  %v814_v62 = vadd.f32 %v812_v41, %v770_v13  ;;  %v819_v53 = vadd.f32 %v817_v26, %v775_v39  ;;  %v820_v34 = vadd.f32 %v818_v8, %v776_v21  ;;  %s2082_s27 = sld [smem:[#allocation2 + $0x91]] }
  0xc7   :  { %v825_v60 = vmul.f32 %v824_v58, %v821_v18  ;;  %v826_v45 = vmul.f32 %v824_v58, %v822_v30  ;;  %v831_v11 = vmul.f32 %v830_v55, %v821_v18  ;;  %v832_v24 = vmul.f32 %v830_v55, %v822_v30  ;;  %s2085_s28 = sld [smem:[#allocation2 + $0x92]] }
  0xc8   :  { %v837_v54 = vmul.f32 %v836_v7, %v821_v18  ;;  %v838_v40 = vmul.f32 %v836_v7, %v822_v30  ;;  %v842_v35 = vmul.f32 %v1939_v42, %v1431_v47  ;;  %v844_v57 = vstv %s1959_s29  ;;  %s2087_s29 = sld [smem:[#allocation2 + $0x93]] }
  0xc9   :  { %v827_v19 = vadd.f32 %v825_v60, %v787_v4  ;;  %v828_v13 = vadd.f32 %v826_v45, %v788_v52  ;;  %v833_v39 = vadd.f32 %v831_v11, %v793_v50  ;;  %v834_v21 = vadd.f32 %v832_v24, %v794_v16 }
  0xca   :  { %v839_v22 = vadd.f32 %v837_v54, %v799_v33  ;;  %v840_v12 = vadd.f32 %v838_v40, %v800_v10  ;;  %v845_v37 = vmul.f32 %v844_v57, %v841_v56  ;;  %v846_v44 = vmul.f32 %v844_v57, %v842_v35 }
  0xcb   :  { %v850_v61 = vstv %s1961_s30  ;;  %v856_v9 = vstv %s1969_s4  ;;  %v861_v38 = vmul.f32 %v1936_v0, %v1443_v59  ;;  %v862_v29 = vmul.f32 %v1939_v42, %v1448_v63  ;;  %s2093_s30 = sld [smem:[#allocation2 + $0x94]] }
  0xcc   :  { %v847_v4 = vadd.f32 %v845_v37, %v807_v17  ;;  %v848_v52 = vadd.f32 %v846_v44, %v808_v32  ;;  %v851_v50 = vmul.f32 %v850_v61, %v841_v56  ;;  %v852_v16 = vmul.f32 %v850_v61, %v842_v35  ;;  %s2095_s4 = sld [smem:[#allocation2 + $0x95]] }
  0xcd   :  { %v857_v2 = vmul.f32 %v856_v9, %v841_v56  ;;  %v858_v33 = vmul.f32 %v856_v9, %v842_v35  ;;  %v864_v10 = vstv %s1971_s5  ;;  %v870_v3 = vstv %s1978_s6  ;;  %s2102_s5 = sld [smem:[#allocation2]] }
  0xce   :  { %v853_v18 = vadd.f32 %v851_v50, %v813_v25  ;;  %v854_v30 = vadd.f32 %v852_v16, %v814_v62  ;;  %v865_v51 = vmul.f32 %v864_v10, %v861_v38  ;;  %v866_v41 = vmul.f32 %v864_v10, %v862_v29  ;;  %s2104_s6 = sld [smem:[#allocation4]] }
  0xcf   :  { %v859_v26 = vadd.f32 %v857_v2, %v819_v53  ;;  %v860_v17 = vadd.f32 %v858_v33, %v820_v34  ;;  %v871_v32 = vmul.f32 %v870_v3, %v861_v38  ;;  %v872_v8 = vmul.f32 %v870_v3, %v862_v29 }
  0xd0   :  { %v867_v58 = vadd.f32 %v865_v51, %v827_v19  ;;  %v868_v55 = vadd.f32 %v866_v41, %v828_v13  ;;  %v876_v7 = vstv %s1980_s7  ;;  %v881_v56 = vmul.f32 %v1936_v0, %v1468_v23  ;;  %s2109_s7 = sld [smem:[#allocation2 + $0x1]] }
  0xd1   :  { %v873_v25 = vadd.f32 %v871_v32, %v833_v39  ;;  %v874_v62 = vadd.f32 %v872_v8, %v834_v21  ;;  %v877_v60 = vmul.f32 %v876_v7, %v861_v38  ;;  %v878_v45 = vmul.f32 %v876_v7, %v862_v29 }
  0xd2   :  { %v882_v53 = vmul.f32 %v1939_v42, %v1473_v28  ;;  %v884_v34 = vstv %s1985_s8  ;;  %v890_v11 = vstv %s1987_s9  ;;  %v896_v24 = vstv %s1989_s10  ;;  %s2111_s8 = sld [smem:[#allocation4 + $0x1]] }
  0xd3   :  { %v879_v54 = vadd.f32 %v877_v60, %v839_v22  ;;  %v880_v40 = vadd.f32 %v878_v45, %v840_v12  ;;  %v885_v35 = vmul.f32 %v884_v34, %v881_v56  ;;  %v891_v57 = vmul.f32 %v890_v11, %v881_v56  ;;  %s2113_s9 = sld [smem:[#allocation2 + $0x2]] }
  0xd4   :  { %v886_v19 = vmul.f32 %v884_v34, %v882_v53  ;;  %v892_v13 = vmul.f32 %v890_v11, %v882_v53  ;;  %v897_v39 = vmul.f32 %v896_v24, %v881_v56  ;;  %v898_v21 = vmul.f32 %v896_v24, %v882_v53  ;;  %s2121_s10 = sld [smem:[#allocation4 + $0x2]] }
  0xd5   :  { %v887_v37 = vadd.f32 %v885_v35, %v847_v4  ;;  %v893_v44 = vadd.f32 %v891_v57, %v853_v18  ;;  %v901_v61 = vmul.f32 %v1936_v0, %v1484_v49  ;;  %v902_v22 = vmul.f32 %v1939_v42, %v1491_v36 }
  0xd6   :  { %v888_v12 = vadd.f32 %v886_v19, %v848_v52  ;;  %v894_v9 = vadd.f32 %v892_v13, %v854_v30  ;;  %v899_v38 = vadd.f32 %v897_v39, %v859_v26  ;;  %v900_v29 = vadd.f32 %v898_v21, %v860_v17 }
  0xd7   :  { %v904_v50 = vstv %s1999_s11  ;;  %v910_v16 = vstv %s2001_s12  ;;  %v916_v2 = vstv %s2003_s0  ;;  %v921_v4 = vmul.f32 %v1936_v0, %v1354_v5  ;;  %s1069_s11 = sadd.f32 %s2104_s6, %s2102_s5 }
  0xd8   :  { %v905_v33 = vmul.f32 %v904_v50, %v901_v61  ;;  %v906_v10 = vmul.f32 %v904_v50, %v902_v22  ;;  %v911_v3 = vmul.f32 %v910_v16, %v901_v61  ;;  %v912_v18 = vmul.f32 %v910_v16, %v902_v22  ;;  %s1079_s12 = sadd.f32 %s2111_s8, %s2109_s7 }
  0xd9   :  { %v917_v51 = vmul.f32 %v916_v2, %v901_v61  ;;  %v918_v52 = vmul.f32 %v916_v2, %v902_v22  ;;  %v922_v30 = vmul.f32 %v1939_v42, %v1358_v6  ;;  %v2037_v41 = vsub.f32 %v921_v4, %v1828_v1 }
  0xda   :  { %v907_v26 = vadd.f32 %v905_v33, %v867_v58  ;;  %v908_v17 = vadd.f32 %v906_v10, %v868_v55  ;;  %v913_v32 = vadd.f32 %v911_v3, %v873_v25  ;;  %v914_v8 = vadd.f32 %v912_v18, %v874_v62  ;;  %s1090_s0 = sadd.f32 %s2121_s10, %s2113_s9 }
  0xdb   :  { %v919_v5 = vadd.f32 %v917_v51, %v879_v54  ;;  %v920_v0 = vadd.f32 %v918_v52, %v880_v40  ;;  %v2042_v7 = vsub.f32 %v922_v30, %v1835_v20  ;;  %v925_v6 = vmul.f32 %v1840_v48, %v2037_v41 }
  0xdc   :  { %v928_v1 = vstv %s2008_s13  ;;  %v934_v42 = vstv %s2015_s14  ;;  %v940_v58 = vstv %s2017_s15  ;;  %v945_v55 = vmul.f32 %v1380_v14, %v2037_v41 }
  0xdd   :  { %v926_v56 = vmul.f32 %v1857_v46, %v2042_v7  ;;  %v929_v25 = vmul.f32 %v928_v1, %v925_v6  ;;  %v935_v20 = vmul.f32 %v934_v42, %v925_v6  ;;  %v941_v62 = vmul.f32 %v940_v58, %v925_v6 }
  0xde   :  { %v946_v48 = vmul.f32 %v1384_v15, %v2042_v7  ;;  %v948_v60 = vstv %s2019_s16  ;;  %v954_v45 = vstv %s2025_s17  ;;  %v960_v53 = vstv %s2027_s18 }
  0xdf   :  { %v930_v34 = vmul.f32 %v928_v1, %v926_v56  ;;  %v931_v14 = vadd.f32 %v929_v25, %v887_v37  ;;  %v936_v11 = vmul.f32 %v934_v42, %v926_v56  ;;  %v937_v24 = vadd.f32 %v935_v20, %v893_v44 }
  0xe0   :  { %v942_v46 = vmul.f32 %v940_v58, %v926_v56  ;;  %v943_v54 = vadd.f32 %v941_v62, %v899_v38  ;;  %v949_v40 = vmul.f32 %v948_v60, %v945_v55  ;;  %v950_v35 = vmul.f32 %v948_v60, %v946_v48 }
  0xe1   :  { %v932_v57 = vadd.f32 %v930_v34, %v888_v12  ;;  %v938_v19 = vadd.f32 %v936_v11, %v894_v9  ;;  %v955_v15 = vmul.f32 %v954_v45, %v945_v55  ;;  %v956_v13 = vmul.f32 %v954_v45, %v946_v48 }
  0xe2   :  { %v944_v39 = vadd.f32 %v942_v46, %v900_v29  ;;  %v951_v21 = vadd.f32 %v949_v40, %v907_v26  ;;  %v952_v37 = vadd.f32 %v950_v35, %v908_v17  ;;  %v961_v44 = vmul.f32 %v960_v53, %v945_v55 }
  0xe3   :  { %v957_v61 = vadd.f32 %v955_v15, %v913_v32  ;;  %v958_v22 = vadd.f32 %v956_v13, %v914_v8  ;;  %v962_v38 = vmul.f32 %v960_v53, %v946_v48  ;;  %v965_v12 = vmul.f32 %v2037_v41, %v1401_v27 }
  0xe4   :  { %v963_v9 = vadd.f32 %v961_v44, %v919_v5  ;;  %v966_v50 = vmul.f32 %v2042_v7, %v1406_v31  ;;  %v968_v16 = vstv %s2039_s19  ;;  %v974_v29 = vstv %s2046_s20 }
  0xe5   :  { %v964_v2 = vadd.f32 %v962_v38, %v920_v0  ;;  %v969_v4 = vmul.f32 %v968_v16, %v965_v12  ;;  %v975_v33 = vmul.f32 %v974_v29, %v965_v12  ;;  %v980_v10 = vstv %s2053_s1 }
  0xe6   :  { %v970_v3 = vmul.f32 %v968_v16, %v966_v50  ;;  %v976_v27 = vmul.f32 %v974_v29, %v966_v50  ;;  %v981_v18 = vmul.f32 %v980_v10, %v965_v12  ;;  %v982_v51 = vmul.f32 %v980_v10, %v966_v50 }
  0xe7   :  { %v971_v31 = vadd.f32 %v969_v4, %v931_v14  ;;  %v977_v52 = vadd.f32 %v975_v33, %v937_v24  ;;  %v985_v30 = vmul.f32 %v2037_v41, %v1424_v43  ;;  %v986_v26 = vmul.f32 %v2042_v7, %v1431_v47 }
  0xe8   :  { %v972_v17 = vadd.f32 %v970_v3, %v932_v57  ;;  %v978_v32 = vadd.f32 %v976_v27, %v938_v19  ;;  %v983_v8 = vadd.f32 %v981_v18, %v943_v54  ;;  %v984_v5 = vadd.f32 %v982_v51, %v944_v39 }
  0xe9   :  { %v988_v0 = vstv %s2057_s2  ;;  %v994_v6 = vstv %s2064_s21  ;;  %v1000_v1 = vstv %s2066_s22  ;;  %v1005_v42 = vmul.f32 %v2037_v41, %v1443_v59 }
  0xea   :  { %v989_v43 = vmul.f32 %v988_v0, %v985_v30  ;;  %v990_v58 = vmul.f32 %v988_v0, %v986_v26  ;;  %v995_v47 = vmul.f32 %v994_v6, %v985_v30  ;;  %v996_v55 = vmul.f32 %v994_v6, %v986_v26 }
  0xeb   :  { %v1001_v56 = vmul.f32 %v1000_v1, %v985_v30  ;;  %v1002_v25 = vmul.f32 %v1000_v1, %v986_v26  ;;  %v1006_v20 = vmul.f32 %v2042_v7, %v1448_v63  ;;  %v1008_v62 = vstv %s2068_s23 }
  0xec   :  { %v991_v48 = vadd.f32 %v989_v43, %v951_v21  ;;  %v992_v59 = vadd.f32 %v990_v58, %v952_v37  ;;  %v997_v60 = vadd.f32 %v995_v47, %v957_v61  ;;  %v998_v45 = vadd.f32 %v996_v55, %v958_v22 }
  0xed   :  { %v1003_v53 = vadd.f32 %v1001_v56, %v963_v9  ;;  %v1004_v34 = vadd.f32 %v1002_v25, %v964_v2  ;;  %v1009_v14 = vmul.f32 %v1008_v62, %v1005_v42  ;;  %v1010_v11 = vmul.f32 %v1008_v62, %v1006_v20 }
  0xee   :  { %v1014_v24 = vstv %s2070_s24  ;;  %v1020_v46 = vstv %s2072_s25  ;;  %v1025_v63 = vmul.f32 %v2037_v41, %v1468_v23  ;;  %v1026_v54 = vmul.f32 %v2042_v7, %v1473_v28 }
  0xef   :  { %v1011_v40 = vadd.f32 %v1009_v14, %v971_v31  ;;  %v1012_v35 = vadd.f32 %v1010_v11, %v972_v17  ;;  %v1015_v57 = vmul.f32 %v1014_v24, %v1005_v42  ;;  %v1016_v19 = vmul.f32 %v1014_v24, %v1006_v20 }
  0xf0   :  { %v1021_v15 = vmul.f32 %v1020_v46, %v1005_v42  ;;  %v1022_v13 = vmul.f32 %v1020_v46, %v1006_v20  ;;  %v1028_v39 = vstv %s2076_s26  ;;  %v1034_v21 = vstv %s2082_s27 }
  0xf1   :  { %v1017_v37 = vadd.f32 %v1015_v57, %v977_v52  ;;  %v1018_v44 = vadd.f32 %v1016_v19, %v978_v32  ;;  %v1029_v23 = vmul.f32 %v1028_v39, %v1025_v63  ;;  %v1030_v61 = vmul.f32 %v1028_v39, %v1026_v54 }
  0xf2   :  { %v1023_v28 = vadd.f32 %v1021_v15, %v983_v8  ;;  %v1024_v22 = vadd.f32 %v1022_v13, %v984_v5  ;;  %v1035_v38 = vmul.f32 %v1034_v21, %v1025_v63  ;;  %v1036_v12 = vmul.f32 %v1034_v21, %v1026_v54 }
  0xf3   :  { %v1031_v9 = vadd.f32 %v1029_v23, %v991_v48  ;;  %v1032_v50 = vadd.f32 %v1030_v61, %v992_v59  ;;  %v1040_v16 = vstv %s2085_s28  ;;  %v1045_v29 = vmul.f32 %v2037_v41, %v1484_v49 }
  0xf4   :  { %v1037_v2 = vadd.f32 %v1035_v38, %v997_v60  ;;  %v1038_v4 = vadd.f32 %v1036_v12, %v998_v45  ;;  %v1041_v33 = vmul.f32 %v1040_v16, %v1025_v63  ;;  %v1042_v10 = vmul.f32 %v1040_v16, %v1026_v54 }
  0xf5   :  { %v1046_v3 = vmul.f32 %v2042_v7, %v1491_v36  ;;  %v1048_v27 = vstv %s2087_s29  ;;  %v1054_v18 = vstv %s2093_s30  ;;  %v1060_v51 = vstv %s2095_s4 }
  0xf6   :  { %v1043_v31 = vadd.f32 %v1041_v33, %v1003_v53  ;;  %v1044_v52 = vadd.f32 %v1042_v10, %v1004_v34  ;;  %v1049_v30 = vmul.f32 %v1048_v27, %v1045_v29  ;;  %v1055_v26 = vmul.f32 %v1054_v18, %v1045_v29 }
  0xf7   :  { %v1050_v17 = vmul.f32 %v1048_v27, %v1046_v3  ;;  %v1056_v32 = vmul.f32 %v1054_v18, %v1046_v3  ;;  %v1061_v49 = vmul.f32 %v1060_v51, %v1045_v29  ;;  %v1062_v41 = vmul.f32 %v1060_v51, %v1046_v3 }
  0xf8   :  { %v1051_v8 = vadd.f32 %v1049_v30, %v1011_v40  ;;  %v1057_v5 = vadd.f32 %v1055_v26, %v1017_v37  ;;  %v1070_v0 = vstv %s1069_s11  ;;  %v1080_v6 = vstv %s1079_s12 }
  0xf9   :  { %v1052_v1 = vadd.f32 %v1050_v17, %v1012_v35  ;;  %v1058_v42 = vadd.f32 %v1056_v32, %v1018_v44  ;;  %v1063_v43 = vadd.f32 %v1061_v49, %v1023_v28  ;;  %v1064_v36 = vadd.f32 %v1062_v41, %v1024_v22 }
  0xfa   :  { %v1065_v7 = vadd.f32 %v1051_v8, %v1031_v9  ;;  %v1075_v58 = vadd.f32 %v1057_v5, %v1037_v2  ;;  %v1091_v47 = vstv %s1090_s0 }
  0xfb   :  { %v1066_v55 = vadd.f32 %v1052_v1, %v1032_v50  ;;  %v1076_v56 = vadd.f32 %v1058_v42, %v1038_v4  ;;  %v1086_v25 = vadd.f32 %v1063_v43, %v1043_v31  ;;  %v1087_v20 = vadd.f32 %v1064_v36, %v1044_v52 }
  0xfc   :  { %v1071_v62 = vadd.f32 %v1070_v0, %v1065_v7  ;;  %v1081_v48 = vadd.f32 %v1080_v6, %v1075_v58 }
  0xfd   :  { %v1072_v59 = vadd.f32 %v1070_v0, %v1066_v55  ;;  %v1082_v60 = vadd.f32 %v1080_v6, %v1076_v56  ;;  %v1092_v45 = vadd.f32 %v1091_v47, %v1086_v25  ;;  %v1093_v53 = vadd.f32 %v1091_v47, %v1087_v20 }
  0xfe   :  { %1073 = vst [vmem:[%s2160_s3] sm:$0xff] %v1071_v62  ;;  %1262 = vst [vmem:[%s2160_s3 + $0x10] sm:$0xff] %v1081_v48 }
  0xff   :  { %1074 = vst [vmem:[%s2160_s3 + $0x8] sm:$0xff] %v1072_v59  ;;  %1263 = vst [vmem:[%s2160_s3 + $0x18] sm:$0xff] %v1082_v60 }
 0x100   :  { %1266 = vst [vmem:[%s2160_s3 + $0x20] sm:$0xff] %v1092_v45  ;;  %1267 = vst [vmem:[%s2160_s3 + $0x28] sm:$0xff] %v1093_v53 }
 0x101   :  { %1102 = vsyncpa [#allocation3], 1 }
 0x102   :  { %1103 = vsyncpa [#allocation5], 1 }

</bundles_post_ra>
